<compile_context>
chip_gen: v6e
topology: v6e:2x2x1
jax: 0.10.0
libtpu: 0.0.40
codegen_flags: <defaults>
</compile_context>

<pallas_src>
import functools

import jax
import jax.numpy as jnp
from jax.experimental import pallas as pl
from jax.experimental.pallas import tpu as pltpu

SE_BOTTLENECK = 128
BN_EPS = 1e-5

_COMPILER_PARAMS = pltpu.CompilerParams(
    dimension_semantics=("parallel",),          # batch grid axis -> both TCs on v7x
    vmem_limit_bytes=32 * 1024 * 1024,
)


def _full_spec(arr):
    """BlockSpec keeping the whole (small) array resident across the grid."""
    nd = arr.ndim
    return pl.BlockSpec(arr.shape, lambda b, _nd=nd: (0,) * _nd)


# --------------------------------------------------------------------------- #
# Stage 1: conv1 (1x1) + ReLU, written split-major: (scale, B, T, width)
# --------------------------------------------------------------------------- #
def _make_conv1_kernel(scale):
    def kernel(x_ref, w1_ref, b1_ref, h_ref):
        xb = x_ref[0].astype(jnp.bfloat16)                        # (T, Cin)
        for s in range(scale):                                    # per-split matmul
            h = jnp.dot(xb, w1_ref[s], preferred_element_type=jnp.float32)
            h_ref[s, 0] = jnp.maximum(h + b1_ref[s], 0.0)         # (T, width)
    return kernel


# --------------------------------------------------------------------------- #
# Stage 2 (x nums): BN-apply + Res2Net dilated conv (stacked taps) + ReLU
# --------------------------------------------------------------------------- #
def _make_branch_kernel(*, T, width, K, dilation, pad, first):
    def kernel(*refs):
        if first:
            h_ref, sc_h, sh_h, wc_ref, bc_ref, out_ref, spp_ref = refs
        else:
            (h_ref, sc_h, sh_h, prev_ref, sc_p, sh_p,
             wc_ref, bc_ref, out_ref, spp_ref) = refs

        # bn1-apply (fused FMA) on this conv1 split ...
        sp_in = h_ref[0, 0] * sc_h[...] + sh_h[...]               # (T, width) f32
        if not first:
            # ... plus the BN-applied previous branch (Res2Net running sum).
            sp_in = sp_in + (prev_ref[0] * sc_p[...] + sh_p[...])

        # Zero-padded time window in a persistent VMEM scratch: only the pad
        # rows are re-zeroed; the interior is overwritten every grid step.
        if pad > 0:
            zeros = jnp.zeros((pad, width), jnp.float32)
            spp_ref[0:pad, :] = zeros
            spp_ref[T + pad:T + 2 * pad, :] = zeros
        spp_ref[pad:pad + T, :] = sp_in

        # Stack the K dilated taps along lanes -> a single MXU matmul with
        # contraction K*width instead of K small matmuls + K adds.
        taps = [spp_ref[k * dilation:k * dilation + T, :] for k in range(K)]
        stacked = jnp.concatenate(taps, axis=1).astype(jnp.bfloat16)
        sp = jnp.dot(stacked, wc_ref[...], preferred_element_type=jnp.float32)
        out_ref[0] = jnp.maximum(sp + bc_ref[...], 0.0)           # pre-BN branch out
    return kernel


# --------------------------------------------------------------------------- #
# Stage 3: conv3 (1x1) accumulated per branch + ReLU  (no channel concat)
# --------------------------------------------------------------------------- #
def _make_conv3_kernel(*, nums):
    def kernel(*refs):
        h_last_ref, sc_h, sh_h = refs[0], refs[1], refs[2]
        sp_refs = refs[3:3 + nums]
        sc_refs = refs[3 + nums:3 + 2 * nums]
        sh_refs = refs[3 + 2 * nums:3 + 3 * nums]
        w3_ref, b3_ref, out_ref = refs[3 + 3 * nums:]

        # pass-through split of conv1 (bn1-applied)
        x_last = h_last_ref[0, 0] * sc_h[...] + sh_h[...]
        acc = jnp.dot(x_last.astype(jnp.bfloat16), w3_ref[nums],
                      preferred_element_type=jnp.float32)
        for i in range(nums):
            yi = sp_refs[i][0] * sc_refs[i][...] + sh_refs[i][...]    # branch BN
            acc = acc + jnp.dot(yi.astype(jnp.bfloat16), w3_ref[i],
                                preferred_element_type=jnp.float32)
        out_ref[0] = jnp.maximum(acc + b3_ref[...], 0.0)          # pre-BN3
    return kernel


# --------------------------------------------------------------------------- #
# Stage 4: BN3-apply + SE (pool + 2 FCs + sigmoid) + residual / upsample
# --------------------------------------------------------------------------- #
def _make_final_kernel(*, T, has_up):
    inv_t = 1.0 / T

    def kernel(*refs):
        if has_up:
            (z_ref, sc3, sh3, wse1, bse1, wse2, bse2,
             x_ref, wup, bup, out_ref) = refs
        else:
            (z_ref, sc3, sh3, wse1, bse1, wse2, bse2,
             x_ref, out_ref) = refs

        z = z_ref[0] * sc3[...] + sh3[...]                        # (T, planes)
        m = jnp.sum(z, axis=0, keepdims=True) * inv_t             # SE time pooling
        s = jnp.dot(m.astype(jnp.bfloat16), wse1[...],
                    preferred_element_type=jnp.float32)
        s = jnp.maximum(s + bse1[...], 0.0)
        s = jnp.dot(s.astype(jnp.bfloat16), wse2[...],
                    preferred_element_type=jnp.float32)
        s = jax.nn.sigmoid(s + bse2[...])                         # (1, planes)

        if has_up:
            ident = jnp.dot(x_ref[0].astype(jnp.bfloat16), wup[...],
                            preferred_element_type=jnp.float32) + bup[...]
        else:
            ident = x_ref[0]
        out_ref[0] = z * s + ident
    return kernel


# --------------------------------------------------------------------------- #
# Wrapper: batch-tiled pipeline of pallas_calls + tiny per-channel BN glue
# --------------------------------------------------------------------------- #
def bottle2neck_forward(x, params, *, kernel_size, dilation, scale, planes):
    B, T, cin = x.shape
    width = planes // scale
    nums = scale - 1
    K = kernel_size
    pad = (K // 2) * dilation
    has_up = 'wup' in params
    f32, bf16 = jnp.float32, jnp.bfloat16

    # ---- host-side weight re-layouts (cheap, once per call) ------------------
    w1s = params['w1'].reshape(cin, scale, width).transpose(1, 0, 2).astype(bf16)
    b1s = params['b1'].reshape(scale, 1, width)
    wc_st = params['wc'].reshape(nums, K * width, width).astype(bf16)   # K-major
    w3s = params['w3'].reshape(scale, width, planes).astype(bf16)
    wse1 = params['wse1'].astype(bf16)
    wse2 = params['wse2'].astype(bf16)

    # ---- stage 1: conv1 + ReLU (pre-BN1), split-major output ----------------
    h_split = pl.pallas_call(
        _make_conv1_kernel(scale),
        out_shape=jax.ShapeDtypeStruct((scale, B, T, width), f32),
        grid=(B,),
        in_specs=[
            pl.BlockSpec((1, T, cin), lambda b: (b, 0, 0)),
            _full_spec(w1s),
            _full_spec(b1s),
        ],
        out_specs=pl.BlockSpec((scale, 1, T, width), lambda b: (0, b, 0, 0)),
        compiler_params=_COMPILER_PARAMS,
    )(x, w1s, b1s)

    # bn1: training-mode batch stats over (B, T), folded into scale/shift.
    mu1 = jnp.mean(h_split, axis=(1, 2))                              # (scale, width)
    var1 = jnp.mean(jnp.square(h_split - mu1[:, None, None, :]), axis=(1, 2))
    g1 = params['g1'].reshape(scale, width)
    be1 = params['be1'].reshape(scale, width)
    scale1 = g1 * jax.lax.rsqrt(var1 + BN_EPS)
    shift1 = be1 - mu1 * scale1

    # ---- stage 2: Res2Net branches -------------------------------------------
    sp_pre, br_scale, br_shift = [], [], []
    for i in range(nums):
        first = (i == 0)
        args = [h_split, scale1[i:i + 1], shift1[i:i + 1]]
        in_specs = [
            pl.BlockSpec((1, 1, T, width), lambda b, _i=i: (_i, b, 0, 0)),
            _full_spec(scale1[i:i + 1]),
            _full_spec(shift1[i:i + 1]),
        ]
        if not first:
            args += [sp_pre[-1], br_scale[-1], br_shift[-1]]
            in_specs += [
                pl.BlockSpec((1, T, width), lambda b: (b, 0, 0)),
                _full_spec(br_scale[-1]),
                _full_spec(br_shift[-1]),
            ]
        wc_i = wc_st[i]
        bc_i = params['bc'][i:i + 1]
        args += [wc_i, bc_i]
        in_specs += [_full_spec(wc_i), _full_spec(bc_i)]

        sp_i = pl.pallas_call(
            _make_branch_kernel(T=T, width=width, K=K, dilation=dilation,
                                pad=pad, first=first),
            out_shape=jax.ShapeDtypeStruct((B, T, width), f32),
            grid=(B,),
            in_specs=in_specs,
            out_specs=pl.BlockSpec((1, T, width), lambda b: (b, 0, 0)),
            scratch_shapes=[pltpu.VMEM((T + 2 * pad, width), f32)],
            compiler_params=_COMPILER_PARAMS,
        )(*args)
        sp_pre.append(sp_i)

        mu_i = jnp.mean(sp_i, axis=(0, 1))                            # (width,)
        var_i = jnp.mean(jnp.square(sp_i - mu_i[None, None, :]), axis=(0, 1))
        sc_i = params['gm'][i] * jax.lax.rsqrt(var_i + BN_EPS)
        sh_i = params['bm'][i] - mu_i * sc_i
        br_scale.append(sc_i.reshape(1, width))
        br_shift.append(sh_i.reshape(1, width))

    # ---- stage 3: conv3 accumulated per branch (pre-BN3) ---------------------
    args = [h_split, scale1[nums:nums + 1], shift1[nums:nums + 1]]
    in_specs = [
        pl.BlockSpec((1, 1, T, width), lambda b: (nums, b, 0, 0)),
        _full_spec(scale1[nums:nums + 1]),
        _full_spec(shift1[nums:nums + 1]),
    ]
    for i in range(nums):
        args.append(sp_pre[i])
        in_specs.append(pl.BlockSpec((1, T, width), lambda b: (b, 0, 0)))
    for v in br_scale + br_shift:
        args.append(v)
        in_specs.append(_full_spec(v))
    args += [w3s, params['b3']]
    in_specs += [_full_spec(w3s), _full_spec(params['b3'])]

    z_pre = pl.pallas_call(
        _make_conv3_kernel(nums=nums),
        out_shape=jax.ShapeDtypeStruct((B, T, planes), f32),
        grid=(B,),
        in_specs=in_specs,
        out_specs=pl.BlockSpec((1, T, planes), lambda b: (b, 0, 0)),
        compiler_params=_COMPILER_PARAMS,
    )(*args)

    # bn3 scale/shift
    mu3 = jnp.mean(z_pre, axis=(0, 1))                                # (planes,)
    var3 = jnp.mean(jnp.square(z_pre - mu3[None, None, :]), axis=(0, 1))
    scale3 = (params['g3'][0] * jax.lax.rsqrt(var3 + BN_EPS)).reshape(1, planes)
    shift3 = (params['be3'][0] - mu3 * scale3[0]).reshape(1, planes)

    # ---- stage 4: BN3-apply + SE + residual ----------------------------------
    args = [z_pre, scale3, shift3, wse1, params['bse1'], wse2, params['bse2'], x]
    in_specs = [
        pl.BlockSpec((1, T, planes), lambda b: (b, 0, 0)),
        _full_spec(scale3), _full_spec(shift3),
        _full_spec(wse1), _full_spec(params['bse1']),
        _full_spec(wse2), _full_spec(params['bse2']),
        pl.BlockSpec((1, T, cin), lambda b: (b, 0, 0)),
    ]
    if has_up:
        wup = params['wup'].astype(bf16)
        args += [wup, params['bup']]
        in_specs += [_full_spec(wup), _full_spec(params['bup'])]

    out = pl.pallas_call(
        _make_final_kernel(T=T, has_up=has_up),
        out_shape=jax.ShapeDtypeStruct((B, T, planes), f32),
        grid=(B,),
        in_specs=in_specs,
        out_specs=pl.BlockSpec((1, T, planes), lambda b: (b, 0, 0)),
        compiler_params=_COMPILER_PARAMS,
    )(*args)
    return out


# --------------------------------------------------------------------------- #
# Params / reference (pure JAX, float32) for verification
# --------------------------------------------------------------------------- #
def init_params(key, inplanes, planes, kernel_size, scale):
    width = planes // scale
    WS = width * scale
    nums = scale - 1
    ks = jax.random.split(key, 18)

    def rn(k, shape, s=0.1):
        return jax.random.normal(k, shape, jnp.float32) * s

    p = dict(
        w1=rn(ks[0], (inplanes, WS)),
        b1=rn(ks[1], (1, WS)),
        g1=1.0 + rn(ks[2], (1, WS)),
        be1=rn(ks[3], (1, WS)),
        wc=rn(ks[4], (nums, kernel_size, width, width)),
        bc=rn(ks[5], (nums, width)),
        gm=1.0 + rn(ks[6], (nums, width)),
        bm=rn(ks[7], (nums, width)),
        w3=rn(ks[8], (WS, planes)),
        b3=rn(ks[9], (1, planes)),
        g3=1.0 + rn(ks[10], (1, planes)),
        be3=rn(ks[11], (1, planes)),
        wse1=rn(ks[12], (planes, SE_BOTTLENECK)),
        bse1=rn(ks[13], (1, SE_BOTTLENECK)),
        wse2=rn(ks[14], (SE_BOTTLENECK, planes)),
        bse2=rn(ks[15], (1, planes)),
    )
    if inplanes != planes:
        p['wup'] = rn(ks[16], (inplanes, planes))
        p['bup'] = rn(ks[17], (1, planes))
    return p


def reference_forward(x, params, *, kernel_size, dilation, scale, planes):
    """Pure-JAX float32 reference with the module's semantics."""
    B, T, _ = x.shape
    width = planes // scale
    nums = scale - 1
    pad = (kernel_size // 2) * dilation

    def bn(h, g, b):
        mu = jnp.mean(h, axis=(0, 1), keepdims=True)
        var = jnp.mean((h - mu) ** 2, axis=(0, 1), keepdims=True)
        return (h - mu) / jnp.sqrt(var + BN_EPS) * g + b

    h = jnp.einsum('btc,cd->btd', x, params['w1']) + params['b1'][None]
    h = jnp.maximum(h, 0.0)
    h = bn(h, params['g1'][None], params['be1'][None])

    outs = []
    sp = None
    for i in range(nums):
        xi = h[..., i * width:(i + 1) * width]
        sp = xi if i == 0 else sp + xi
        spp = jnp.pad(sp, ((0, 0), (pad, pad), (0, 0)))
        acc = jnp.zeros((B, T, width), jnp.float32)
        for k in range(kernel_size):
            acc = acc + jnp.einsum('btc,cd->btd',
                                   spp[:, k * dilation:k * dilation + T, :],
                                   params['wc'][i, k])
        sp = jnp.maximum(acc + params['bc'][i][None, None, :], 0.0)
        sp = bn(sp, params['gm'][i][None, None, :], params['bm'][i][None, None, :])
        outs.append(sp)
    outs.append(h[..., nums * width:])
    y = jnp.concatenate(outs, axis=-1)

    z = jnp.einsum('btc,cd->btd', y, params['w3']) + params['b3'][None]
    z = jnp.maximum(z, 0.0)
    z = bn(z, params['g3'][None], params['be3'][None])

    m = jnp.mean(z, axis=1)
    s = jnp.maximum(m @ params['wse1'] + params['bse1'], 0.0)
    s = jax.nn.sigmoid(s @ params['wse2'] + params['bse2'])
    z = z * s[:, None, :]

    if 'wup' in params:
        ident = jnp.einsum('btc,cd->btd', x, params['wup']) + params['bup'][None]
    else:
        ident = x
    return z + ident


if __name__ == "__main__":
    # Small config consistent with the module: inplanes != planes exercises the
    # upsample branch; scale=4 -> width=8, nums=3; kernel_size=3, dilation=2.
    B, T = 2, 16
    inplanes, planes, kernel_size, dilation, scale = 16, 32, 3, 2, 4

    key = jax.random.PRNGKey(0)
    kx, kp = jax.random.split(key)
    x = jax.random.normal(kx, (B, T, inplanes), jnp.float32)
    params = init_params(kp, inplanes, planes, kernel_size, scale)

    fwd = jax.jit(functools.partial(bottle2neck_forward, kernel_size=kernel_size,
                                    dilation=dilation, scale=scale, planes=planes))
    out = fwd(x, params)
    out = jax.block_until_ready(out)

    ref = reference_forward(x, params, kernel_size=kernel_size,
                            dilation=dilation, scale=scale, planes=planes)
    assert out.shape == (B, T, planes)
    # bf16 matmuls (f32 accumulation) vs the pure-f32 reference: loose tolerance.
    if not jnp.allclose(out, ref, atol=5e-2, rtol=5e-2):
        raise AssertionError("Pallas kernel does not match JAX reference")

    print("KERNEL_OK")
</pallas_src>

<mosaic_0001>
module attributes {stable_mosaic.version = 11 : i64} {
  func.func @kernel(%arg0: i32, %arg1: memref<1x16x16xf32, #tpu.memory_space<vmem>>, %arg2: memref<4x16x8xbf16, #tpu.memory_space<vmem>>, %arg3: memref<4x1x8xf32, #tpu.memory_space<vmem>>, %arg4: memref<4x1x16x8xf32, #tpu.memory_space<vmem>>) attributes {dimension_semantics = [#tpu.dimension_semantics<parallel>], iteration_bounds = array<i64: 2>, scalar_prefetch = 0 : i64, scratch_operands = 0 : i64, tpu.core_type = #tpu.core_type<tc>, window_params = [{transform_indices = @transform_0, window_bounds = array<i64: 1, 16, 16>}, {pipeline_mode = #tpu.pipeline_mode<synchronous>, transform_indices = @transform_1, window_bounds = array<i64: 4, 16, 8>}, {pipeline_mode = #tpu.pipeline_mode<synchronous>, transform_indices = @transform_2, window_bounds = array<i64: 4, 1, 8>}, {transform_indices = @transform_3, window_bounds = array<i64: 4, 1, 16, 8>}]} {
    %c0 = arith.constant 0 : index
    %c0_0 = arith.constant 0 : index
    %c0_1 = arith.constant 0 : index
    %0 = vector.load %arg1[%c0, %c0_0, %c0_1] : memref<1x16x16xf32, #tpu.memory_space<vmem>>, vector<1x16x16xf32>
    %1 = vector.shape_cast %0 : vector<1x16x16xf32> to vector<16x16xf32>
    %2 = arith.truncf %1 : vector<16x16xf32> to vector<16x16xbf16>
    %c0_2 = arith.constant 0 : index
    %c0_3 = arith.constant 0 : index
    %c0_4 = arith.constant 0 : index
    %3 = vector.load %arg2[%c0_2, %c0_3, %c0_4] : memref<4x16x8xbf16, #tpu.memory_space<vmem>>, vector<1x16x8xbf16>
    %4 = vector.shape_cast %3 : vector<1x16x8xbf16> to vector<16x8xbf16>
    %cst = arith.constant dense<0.000000e+00> : vector<16x8xf32>
    %5 = tpu.matmul %2, %4, %cst {dimension_numbers = #tpu.dot_dimension_numbers<[1], [0], [0], [1], [0, 0, 1, 1], [], []>} : vector<16x16xbf16>, vector<16x8xbf16>, vector<16x8xf32> -> vector<16x8xf32>
    %c0_5 = arith.constant 0 : index
    %c0_6 = arith.constant 0 : index
    %c0_7 = arith.constant 0 : index
    %6 = vector.load %arg3[%c0_5, %c0_6, %c0_7] : memref<4x1x8xf32, #tpu.memory_space<vmem>>, vector<1x1x8xf32>
    %7 = vector.shape_cast %6 : vector<1x1x8xf32> to vector<1x8xf32>
    %8 = vector.broadcast %7 : vector<1x8xf32> to vector<16x8xf32>
    %9 = arith.addf %5, %8 : vector<16x8xf32>
    %cst_8 = arith.constant 0.000000e+00 : f32
    %10 = vector.broadcast %cst_8 : f32 to vector<16x8xf32>
    %11 = arith.maximumf %9, %10 : vector<16x8xf32>
    %c0_9 = arith.constant 0 : index
    %c0_10 = arith.constant 0 : index
    %c0_11 = arith.constant 0 : index
    %c0_12 = arith.constant 0 : index
    %12 = vector.load %arg4[%c0_9, %c0_10, %c0_11, %c0_12] : memref<4x1x16x8xf32, #tpu.memory_space<vmem>>, vector<1x1x16x8xf32>
    %13 = vector.shape_cast %12 : vector<1x1x16x8xf32> to vector<16x8xf32>
    %14 = vector.shape_cast %11 : vector<16x8xf32> to vector<1x1x16x8xf32>
    tpu.vector_store %arg4[%c0_9, %c0_10, %c0_11, %c0_12], %14 {strides = array<i32>} : memref<4x1x16x8xf32, #tpu.memory_space<vmem>>, vector<1x1x16x8xf32>,
    %c1 = arith.constant 1 : index
    %c0_13 = arith.constant 0 : index
    %c0_14 = arith.constant 0 : index
    %15 = vector.load %arg2[%c1, %c0_13, %c0_14] : memref<4x16x8xbf16, #tpu.memory_space<vmem>>, vector<1x16x8xbf16>
    %16 = vector.shape_cast %15 : vector<1x16x8xbf16> to vector<16x8xbf16>
    %cst_15 = arith.constant dense<0.000000e+00> : vector<16x8xf32>
    %17 = tpu.matmul %2, %16, %cst_15 {dimension_numbers = #tpu.dot_dimension_numbers<[1], [0], [0], [1], [0, 0, 1, 1], [], []>} : vector<16x16xbf16>, vector<16x8xbf16>, vector<16x8xf32> -> vector<16x8xf32>
    %c1_16 = arith.constant 1 : index
    %c0_17 = arith.constant 0 : index
    %c0_18 = arith.constant 0 : index
    %18 = vector.load %arg3[%c1_16, %c0_17, %c0_18] : memref<4x1x8xf32, #tpu.memory_space<vmem>>, vector<1x1x8xf32>
    %19 = vector.shape_cast %18 : vector<1x1x8xf32> to vector<1x8xf32>
    %20 = vector.broadcast %19 : vector<1x8xf32> to vector<16x8xf32>
    %21 = arith.addf %17, %20 : vector<16x8xf32>
    %cst_19 = arith.constant 0.000000e+00 : f32
    %22 = vector.broadcast %cst_19 : f32 to vector<16x8xf32>
    %23 = arith.maximumf %21, %22 : vector<16x8xf32>
    %c1_20 = arith.constant 1 : index
    %c0_21 = arith.constant 0 : index
    %c0_22 = arith.constant 0 : index
    %c0_23 = arith.constant 0 : index
    %24 = vector.load %arg4[%c1_20, %c0_21, %c0_22, %c0_23] : memref<4x1x16x8xf32, #tpu.memory_space<vmem>>, vector<1x1x16x8xf32>
    %25 = vector.shape_cast %24 : vector<1x1x16x8xf32> to vector<16x8xf32>
    %26 = vector.shape_cast %23 : vector<16x8xf32> to vector<1x1x16x8xf32>
    tpu.vector_store %arg4[%c1_20, %c0_21, %c0_22, %c0_23], %26 {strides = array<i32>} : memref<4x1x16x8xf32, #tpu.memory_space<vmem>>, vector<1x1x16x8xf32>,
    %c2 = arith.constant 2 : index
    %c0_24 = arith.constant 0 : index
    %c0_25 = arith.constant 0 : index
    %27 = vector.load %arg2[%c2, %c0_24, %c0_25] : memref<4x16x8xbf16, #tpu.memory_space<vmem>>, vector<1x16x8xbf16>
    %28 = vector.shape_cast %27 : vector<1x16x8xbf16> to vector<16x8xbf16>
    %cst_26 = arith.constant dense<0.000000e+00> : vector<16x8xf32>
    %29 = tpu.matmul %2, %28, %cst_26 {dimension_numbers = #tpu.dot_dimension_numbers<[1], [0], [0], [1], [0, 0, 1, 1], [], []>} : vector<16x16xbf16>, vector<16x8xbf16>, vector<16x8xf32> -> vector<16x8xf32>
    %c2_27 = arith.constant 2 : index
    %c0_28 = arith.constant 0 : index
    %c0_29 = arith.constant 0 : index
    %30 = vector.load %arg3[%c2_27, %c0_28, %c0_29] : memref<4x1x8xf32, #tpu.memory_space<vmem>>, vector<1x1x8xf32>
    %31 = vector.shape_cast %30 : vector<1x1x8xf32> to vector<1x8xf32>
    %32 = vector.broadcast %31 : vector<1x8xf32> to vector<16x8xf32>
    %33 = arith.addf %29, %32 : vector<16x8xf32>
    %cst_30 = arith.constant 0.000000e+00 : f32
    %34 = vector.broadcast %cst_30 : f32 to vector<16x8xf32>
    %35 = arith.maximumf %33, %34 : vector<16x8xf32>
    %c2_31 = arith.constant 2 : index
    %c0_32 = arith.constant 0 : index
    %c0_33 = arith.constant 0 : index
    %c0_34 = arith.constant 0 : index
    %36 = vector.load %arg4[%c2_31, %c0_32, %c0_33, %c0_34] : memref<4x1x16x8xf32, #tpu.memory_space<vmem>>, vector<1x1x16x8xf32>
    %37 = vector.shape_cast %36 : vector<1x1x16x8xf32> to vector<16x8xf32>
    %38 = vector.shape_cast %35 : vector<16x8xf32> to vector<1x1x16x8xf32>
    tpu.vector_store %arg4[%c2_31, %c0_32, %c0_33, %c0_34], %38 {strides = array<i32>} : memref<4x1x16x8xf32, #tpu.memory_space<vmem>>, vector<1x1x16x8xf32>,
    %c3 = arith.constant 3 : index
    %c0_35 = arith.constant 0 : index
    %c0_36 = arith.constant 0 : index
    %39 = vector.load %arg2[%c3, %c0_35, %c0_36] : memref<4x16x8xbf16, #tpu.memory_space<vmem>>, vector<1x16x8xbf16>
    %40 = vector.shape_cast %39 : vector<1x16x8xbf16> to vector<16x8xbf16>
    %cst_37 = arith.constant dense<0.000000e+00> : vector<16x8xf32>
    %41 = tpu.matmul %2, %40, %cst_37 {dimension_numbers = #tpu.dot_dimension_numbers<[1], [0], [0], [1], [0, 0, 1, 1], [], []>} : vector<16x16xbf16>, vector<16x8xbf16>, vector<16x8xf32> -> vector<16x8xf32>
    %c3_38 = arith.constant 3 : index
    %c0_39 = arith.constant 0 : index
    %c0_40 = arith.constant 0 : index
    %42 = vector.load %arg3[%c3_38, %c0_39, %c0_40] : memref<4x1x8xf32, #tpu.memory_space<vmem>>, vector<1x1x8xf32>
    %43 = vector.shape_cast %42 : vector<1x1x8xf32> to vector<1x8xf32>
    %44 = vector.broadcast %43 : vector<1x8xf32> to vector<16x8xf32>
    %45 = arith.addf %41, %44 : vector<16x8xf32>
    %cst_41 = arith.constant 0.000000e+00 : f32
    %46 = vector.broadcast %cst_41 : f32 to vector<16x8xf32>
    %47 = arith.maximumf %45, %46 : vector<16x8xf32>
    %c3_42 = arith.constant 3 : index
    %c0_43 = arith.constant 0 : index
    %c0_44 = arith.constant 0 : index
    %c0_45 = arith.constant 0 : index
    %48 = vector.load %arg4[%c3_42, %c0_43, %c0_44, %c0_45] : memref<4x1x16x8xf32, #tpu.memory_space<vmem>>, vector<1x1x16x8xf32>
    %49 = vector.shape_cast %48 : vector<1x1x16x8xf32> to vector<16x8xf32>
    %50 = vector.shape_cast %47 : vector<16x8xf32> to vector<1x1x16x8xf32>
    tpu.vector_store %arg4[%c3_42, %c0_43, %c0_44, %c0_45], %50 {strides = array<i32>} : memref<4x1x16x8xf32, #tpu.memory_space<vmem>>, vector<1x1x16x8xf32>,
    return
  }
  func.func @transform_0(%arg0: i32) -> (i32, i32, i32) {
    %c0_i32 = arith.constant 0 : i32
    %c0_i32_0 = arith.constant 0 : i32
    %c0_i32_1 = arith.constant 0 : i32
    return %arg0, %c0_i32, %c0_i32_0 : i32, i32, i32
  }
  func.func @transform_1(%arg0: i32) -> (i32, i32, i32) {
    %c0_i32 = arith.constant 0 : i32
    %c0_i32_0 = arith.constant 0 : i32
    %c0_i32_1 = arith.constant 0 : i32
    %c0_i32_2 = arith.constant 0 : i32
    return %c0_i32, %c0_i32_0, %c0_i32_1 : i32, i32, i32
  }
  func.func @transform_2(%arg0: i32) -> (i32, i32, i32) {
    %c0_i32 = arith.constant 0 : i32
    %c0_i32_0 = arith.constant 0 : i32
    %c0_i32_1 = arith.constant 0 : i32
    %c0_i32_2 = arith.constant 0 : i32
    return %c0_i32, %c0_i32_0, %c0_i32_1 : i32, i32, i32
  }
  func.func @transform_3(%arg0: i32) -> (i32, i32, i32, i32) {
    %c0_i32 = arith.constant 0 : i32
    %c0_i32_0 = arith.constant 0 : i32
    %c0_i32_1 = arith.constant 0 : i32
    %c0_i32_2 = arith.constant 0 : i32
    return %c0_i32, %arg0, %c0_i32_0, %c0_i32_1 : i32, i32, i32, i32
  }
}

module attributes {stable_mosaic.version = 11 : i64} {
  func.func @kernel(%arg0: i32, %arg1: memref<1x1x16x8xf32, #tpu.memory_space<vmem>>, %arg2: memref<1x8xf32, #tpu.memory_space<vmem>>, %arg3: memref<1x8xf32, #tpu.memory_space<vmem>>, %arg4: memref<24x8xbf16, #tpu.memory_space<vmem>>, %arg5: memref<1x8xf32, #tpu.memory_space<vmem>>, %arg6: memref<1x16x8xf32, #tpu.memory_space<vmem>>, %arg7: memref<20x8xf32, #tpu.memory_space<vmem>>) attributes {dimension_semantics = [#tpu.dimension_semantics<parallel>], iteration_bounds = array<i64: 2>, scalar_prefetch = 0 : i64, scratch_operands = 1 : i64, tpu.core_type = #tpu.core_type<tc>, window_params = [{transform_indices = @transform_0, window_bounds = array<i64: 1, 1, 16, 8>}, {pipeline_mode = #tpu.pipeline_mode<synchronous>, transform_indices = @transform_1, window_bounds = array<i64: 1, 8>}, {pipeline_mode = #tpu.pipeline_mode<synchronous>, transform_indices = @transform_2, window_bounds = array<i64: 1, 8>}, {pipeline_mode = #tpu.pipeline_mode<synchronous>, transform_indices = @transform_3, window_bounds = array<i64: 24, 8>}, {pipeline_mode = #tpu.pipeline_mode<synchronous>, transform_indices = @transform_4, window_bounds = array<i64: 1, 8>}, {transform_indices = @transform_5, window_bounds = array<i64: 1, 16, 8>}]} {
    %c0 = arith.constant 0 : index
    %c0_0 = arith.constant 0 : index
    %c0_1 = arith.constant 0 : index
    %c0_2 = arith.constant 0 : index
    %0 = vector.load %arg1[%c0, %c0_0, %c0_1, %c0_2] : memref<1x1x16x8xf32, #tpu.memory_space<vmem>>, vector<1x1x16x8xf32>
    %1 = vector.shape_cast %0 : vector<1x1x16x8xf32> to vector<16x8xf32>
    %c0_3 = arith.constant 0 : index
    %c0_4 = arith.constant 0 : index
    %2 = vector.load %arg2[%c0_3, %c0_4] : memref<1x8xf32, #tpu.memory_space<vmem>>, vector<1x8xf32>
    %3 = vector.broadcast %2 : vector<1x8xf32> to vector<16x8xf32>
    %4 = arith.mulf %1, %3 : vector<16x8xf32>
    %c0_5 = arith.constant 0 : index
    %c0_6 = arith.constant 0 : index
    %5 = vector.load %arg3[%c0_5, %c0_6] : memref<1x8xf32, #tpu.memory_space<vmem>>, vector<1x8xf32>
    %6 = vector.broadcast %5 : vector<1x8xf32> to vector<16x8xf32>
    %7 = arith.addf %4, %6 : vector<16x8xf32>
    %cst = arith.constant 0.000000e+00 : f32
    %8 = vector.broadcast %cst : f32 to vector<2x8xf32>
    %c0_7 = arith.constant 0 : index
    %c0_8 = arith.constant 0 : index
    %9 = vector.load %arg7[%c0_7, %c0_8] : memref<20x8xf32, #tpu.memory_space<vmem>>, vector<2x8xf32>
    tpu.vector_store %arg7[%c0_7, %c0_8], %8 {strides = array<i32>} : memref<20x8xf32, #tpu.memory_space<vmem>>, vector<2x8xf32>,
    %c18 = arith.constant 18 : index
    %c0_9 = arith.constant 0 : index
    %10 = vector.load %arg7[%c18, %c0_9] : memref<20x8xf32, #tpu.memory_space<vmem>>, vector<2x8xf32>
    tpu.vector_store %arg7[%c18, %c0_9], %8 {strides = array<i32>} : memref<20x8xf32, #tpu.memory_space<vmem>>, vector<2x8xf32>,
    %c2 = arith.constant 2 : index
    %c0_10 = arith.constant 0 : index
    %11 = vector.load %arg7[%c2, %c0_10] : memref<20x8xf32, #tpu.memory_space<vmem>>, vector<16x8xf32>
    tpu.vector_store %arg7[%c2, %c0_10], %7 {strides = array<i32>} : memref<20x8xf32, #tpu.memory_space<vmem>>, vector<16x8xf32>,
    %c0_11 = arith.constant 0 : index
    %c0_12 = arith.constant 0 : index
    %12 = vector.load %arg7[%c0_11, %c0_12] : memref<20x8xf32, #tpu.memory_space<vmem>>, vector<16x8xf32>
    %c2_13 = arith.constant 2 : index
    %c0_14 = arith.constant 0 : index
    %13 = vector.load %arg7[%c2_13, %c0_14] : memref<20x8xf32, #tpu.memory_space<vmem>>, vector<16x8xf32>
    %c4 = arith.constant 4 : index
    %c0_15 = arith.constant 0 : index
    %14 = vector.load %arg7[%c4, %c0_15] : memref<20x8xf32, #tpu.memory_space<vmem>>, vector<16x8xf32>
    %15 = tpu.concatenate %12, %13, %14 in 1 : vector<16x8xf32>, vector<16x8xf32>, vector<16x8xf32> -> vector<16x24xf32>
    %16 = arith.truncf %15 : vector<16x24xf32> to vector<16x24xbf16>
    %c0_16 = arith.constant 0 : index
    %c0_17 = arith.constant 0 : index
    %17 = vector.load %arg4[%c0_16, %c0_17] : memref<24x8xbf16, #tpu.memory_space<vmem>>, vector<24x8xbf16>
    %cst_18 = arith.constant dense<0.000000e+00> : vector<16x8xf32>
    %18 = tpu.matmul %16, %17, %cst_18 {dimension_numbers = #tpu.dot_dimension_numbers<[1], [0], [0], [1], [0, 0, 1, 1], [], []>} : vector<16x24xbf16>, vector<24x8xbf16>, vector<16x8xf32> -> vector<16x8xf32>
    %c0_19 = arith.constant 0 : index
    %c0_20 = arith.constant 0 : index
    %19 = vector.load %arg5[%c0_19, %c0_20] : memref<1x8xf32, #tpu.memory_space<vmem>>, vector<1x8xf32>
    %20 = vector.broadcast %19 : vector<1x8xf32> to vector<16x8xf32>
    %21 = arith.addf %18, %20 : vector<16x8xf32>
    %cst_21 = arith.constant 0.000000e+00 : f32
    %22 = vector.broadcast %cst_21 : f32 to vector<16x8xf32>
    %23 = arith.maximumf %21, %22 : vector<16x8xf32>
    %c0_22 = arith.constant 0 : index
    %c0_23 = arith.constant 0 : index
    %c0_24 = arith.constant 0 : index
    %24 = vector.load %arg6[%c0_22, %c0_23, %c0_24] : memref<1x16x8xf32, #tpu.memory_space<vmem>>, vector<1x16x8xf32>
    %25 = vector.shape_cast %24 : vector<1x16x8xf32> to vector<16x8xf32>
    %26 = vector.shape_cast %23 : vector<16x8xf32> to vector<1x16x8xf32>
    tpu.vector_store %arg6[%c0_22, %c0_23, %c0_24], %26 {strides = array<i32>} : memref<1x16x8xf32, #tpu.memory_space<vmem>>, vector<1x16x8xf32>,
    return
  }
  func.func @transform_0(%arg0: i32) -> (i32, i32, i32, i32) {
    %c0_i32 = arith.constant 0 : i32
    %c0_i32_0 = arith.constant 0 : i32
    %c0_i32_1 = arith.constant 0 : i32
    %c0_i32_2 = arith.constant 0 : i32
    return %c0_i32, %arg0, %c0_i32_0, %c0_i32_1 : i32, i32, i32, i32
  }
  func.func @transform_1(%arg0: i32) -> (i32, i32) {
    %c0_i32 = arith.constant 0 : i32
    %c0_i32_0 = arith.constant 0 : i32
    %c0_i32_1 = arith.constant 0 : i32
    return %c0_i32, %c0_i32_0 : i32, i32
  }
  func.func @transform_2(%arg0: i32) -> (i32, i32) {
    %c0_i32 = arith.constant 0 : i32
    %c0_i32_0 = arith.constant 0 : i32
    %c0_i32_1 = arith.constant 0 : i32
    return %c0_i32, %c0_i32_0 : i32, i32
  }
  func.func @transform_3(%arg0: i32) -> (i32, i32) {
    %c0_i32 = arith.constant 0 : i32
    %c0_i32_0 = arith.constant 0 : i32
    %c0_i32_1 = arith.constant 0 : i32
    return %c0_i32, %c0_i32_0 : i32, i32
  }
  func.func @transform_4(%arg0: i32) -> (i32, i32) {
    %c0_i32 = arith.constant 0 : i32
    %c0_i32_0 = arith.constant 0 : i32
    %c0_i32_1 = arith.constant 0 : i32
    return %c0_i32, %c0_i32_0 : i32, i32
  }
  func.func @transform_5(%arg0: i32) -> (i32, i32, i32) {
    %c0_i32 = arith.constant 0 : i32
    %c0_i32_0 = arith.constant 0 : i32
    %c0_i32_1 = arith.constant 0 : i32
    return %arg0, %c0_i32, %c0_i32_0 : i32, i32, i32
  }
}

module attributes {stable_mosaic.version = 11 : i64} {
  func.func @kernel(%arg0: i32, %arg1: memref<1x1x16x8xf32, #tpu.memory_space<vmem>>, %arg2: memref<1x8xf32, #tpu.memory_space<vmem>>, %arg3: memref<1x8xf32, #tpu.memory_space<vmem>>, %arg4: memref<1x16x8xf32, #tpu.memory_space<vmem>>, %arg5: memref<1x8xf32, #tpu.memory_space<vmem>>, %arg6: memref<1x8xf32, #tpu.memory_space<vmem>>, %arg7: memref<24x8xbf16, #tpu.memory_space<vmem>>, %arg8: memref<1x8xf32, #tpu.memory_space<vmem>>, %arg9: memref<1x16x8xf32, #tpu.memory_space<vmem>>, %arg10: memref<20x8xf32, #tpu.memory_space<vmem>>) attributes {dimension_semantics = [#tpu.dimension_semantics<parallel>], iteration_bounds = array<i64: 2>, scalar_prefetch = 0 : i64, scratch_operands = 1 : i64, tpu.core_type = #tpu.core_type<tc>, window_params = [{transform_indices = @transform_0, window_bounds = array<i64: 1, 1, 16, 8>}, {pipeline_mode = #tpu.pipeline_mode<synchronous>, transform_indices = @transform_1, window_bounds = array<i64: 1, 8>}, {pipeline_mode = #tpu.pipeline_mode<synchronous>, transform_indices = @transform_2, window_bounds = array<i64: 1, 8>}, {transform_indices = @transform_3, window_bounds = array<i64: 1, 16, 8>}, {pipeline_mode = #tpu.pipeline_mode<synchronous>, transform_indices = @transform_4, window_bounds = array<i64: 1, 8>}, {pipeline_mode = #tpu.pipeline_mode<synchronous>, transform_indices = @transform_5, window_bounds = array<i64: 1, 8>}, {pipeline_mode = #tpu.pipeline_mode<synchronous>, transform_indices = @transform_6, window_bounds = array<i64: 24, 8>}, {pipeline_mode = #tpu.pipeline_mode<synchronous>, transform_indices = @transform_7, window_bounds = array<i64: 1, 8>}, {transform_indices = @transform_8, window_bounds = array<i64: 1, 16, 8>}]} {
    %c0 = arith.constant 0 : index
    %c0_0 = arith.constant 0 : index
    %c0_1 = arith.constant 0 : index
    %c0_2 = arith.constant 0 : index
    %0 = vector.load %arg1[%c0, %c0_0, %c0_1, %c0_2] : memref<1x1x16x8xf32, #tpu.memory_space<vmem>>, vector<1x1x16x8xf32>
    %1 = vector.shape_cast %0 : vector<1x1x16x8xf32> to vector<16x8xf32>
    %c0_3 = arith.constant 0 : index
    %c0_4 = arith.constant 0 : index
    %2 = vector.load %arg2[%c0_3, %c0_4] : memref<1x8xf32, #tpu.memory_space<vmem>>, vector<1x8xf32>
    %3 = vector.broadcast %2 : vector<1x8xf32> to vector<16x8xf32>
    %4 = arith.mulf %1, %3 : vector<16x8xf32>
    %c0_5 = arith.constant 0 : index
    %c0_6 = arith.constant 0 : index
    %5 = vector.load %arg3[%c0_5, %c0_6] : memref<1x8xf32, #tpu.memory_space<vmem>>, vector<1x8xf32>
    %6 = vector.broadcast %5 : vector<1x8xf32> to vector<16x8xf32>
    %7 = arith.addf %4, %6 : vector<16x8xf32>
    %c0_7 = arith.constant 0 : index
    %c0_8 = arith.constant 0 : index
    %c0_9 = arith.constant 0 : index
    %8 = vector.load %arg4[%c0_7, %c0_8, %c0_9] : memref<1x16x8xf32, #tpu.memory_space<vmem>>, vector<1x16x8xf32>
    %9 = vector.shape_cast %8 : vector<1x16x8xf32> to vector<16x8xf32>
    %c0_10 = arith.constant 0 : index
    %c0_11 = arith.constant 0 : index
    %10 = vector.load %arg5[%c0_10, %c0_11] : memref<1x8xf32, #tpu.memory_space<vmem>>, vector<1x8xf32>
    %11 = vector.broadcast %10 : vector<1x8xf32> to vector<16x8xf32>
    %12 = arith.mulf %9, %11 : vector<16x8xf32>
    %c0_12 = arith.constant 0 : index
    %c0_13 = arith.constant 0 : index
    %13 = vector.load %arg6[%c0_12, %c0_13] : memref<1x8xf32, #tpu.memory_space<vmem>>, vector<1x8xf32>
    %14 = vector.broadcast %13 : vector<1x8xf32> to vector<16x8xf32>
    %15 = arith.addf %12, %14 : vector<16x8xf32>
    %16 = arith.addf %7, %15 : vector<16x8xf32>
    %cst = arith.constant 0.000000e+00 : f32
    %17 = vector.broadcast %cst : f32 to vector<2x8xf32>
    %c0_14 = arith.constant 0 : index
    %c0_15 = arith.constant 0 : index
    %18 = vector.load %arg10[%c0_14, %c0_15] : memref<20x8xf32, #tpu.memory_space<vmem>>, vector<2x8xf32>
    tpu.vector_store %arg10[%c0_14, %c0_15], %17 {strides = array<i32>} : memref<20x8xf32, #tpu.memory_space<vmem>>, vector<2x8xf32>,
    %c18 = arith.constant 18 : index
    %c0_16 = arith.constant 0 : index
    %19 = vector.load %arg10[%c18, %c0_16] : memref<20x8xf32, #tpu.memory_space<vmem>>, vector<2x8xf32>
    tpu.vector_store %arg10[%c18, %c0_16], %17 {strides = array<i32>} : memref<20x8xf32, #tpu.memory_space<vmem>>, vector<2x8xf32>,
    %c2 = arith.constant 2 : index
    %c0_17 = arith.constant 0 : index
    %20 = vector.load %arg10[%c2, %c0_17] : memref<20x8xf32, #tpu.memory_space<vmem>>, vector<16x8xf32>
    tpu.vector_store %arg10[%c2, %c0_17], %16 {strides = array<i32>} : memref<20x8xf32, #tpu.memory_space<vmem>>, vector<16x8xf32>,
    %c0_18 = arith.constant 0 : index
    %c0_19 = arith.constant 0 : index
    %21 = vector.load %arg10[%c0_18, %c0_19] : memref<20x8xf32, #tpu.memory_space<vmem>>, vector<16x8xf32>
    %c2_20 = arith.constant 2 : index
    %c0_21 = arith.constant 0 : index
    %22 = vector.load %arg10[%c2_20, %c0_21] : memref<20x8xf32, #tpu.memory_space<vmem>>, vector<16x8xf32>
    %c4 = arith.constant 4 : index
    %c0_22 = arith.constant 0 : index
    %23 = vector.load %arg10[%c4, %c0_22] : memref<20x8xf32, #tpu.memory_space<vmem>>, vector<16x8xf32>
    %24 = tpu.concatenate %21, %22, %23 in 1 : vector<16x8xf32>, vector<16x8xf32>, vector<16x8xf32> -> vector<16x24xf32>
    %25 = arith.truncf %24 : vector<16x24xf32> to vector<16x24xbf16>
    %c0_23 = arith.constant 0 : index
    %c0_24 = arith.constant 0 : index
    %26 = vector.load %arg7[%c0_23, %c0_24] : memref<24x8xbf16, #tpu.memory_space<vmem>>, vector<24x8xbf16>
    %cst_25 = arith.constant dense<0.000000e+00> : vector<16x8xf32>
    %27 = tpu.matmul %25, %26, %cst_25 {dimension_numbers = #tpu.dot_dimension_numbers<[1], [0], [0], [1], [0, 0, 1, 1], [], []>} : vector<16x24xbf16>, vector<24x8xbf16>, vector<16x8xf32> -> vector<16x8xf32>
    %c0_26 = arith.constant 0 : index
    %c0_27 = arith.constant 0 : index
    %28 = vector.load %arg8[%c0_26, %c0_27] : memref<1x8xf32, #tpu.memory_space<vmem>>, vector<1x8xf32>
    %29 = vector.broadcast %28 : vector<1x8xf32> to vector<16x8xf32>
    %30 = arith.addf %27, %29 : vector<16x8xf32>
    %cst_28 = arith.constant 0.000000e+00 : f32
    %31 = vector.broadcast %cst_28 : f32 to vector<16x8xf32>
    %32 = arith.maximumf %30, %31 : vector<16x8xf32>
    %c0_29 = arith.constant 0 : index
    %c0_30 = arith.constant 0 : index
    %c0_31 = arith.constant 0 : index
    %33 = vector.load %arg9[%c0_29, %c0_30, %c0_31] : memref<1x16x8xf32, #tpu.memory_space<vmem>>, vector<1x16x8xf32>
    %34 = vector.shape_cast %33 : vector<1x16x8xf32> to vector<16x8xf32>
    %35 = vector.shape_cast %32 : vector<16x8xf32> to vector<1x16x8xf32>
    tpu.vector_store %arg9[%c0_29, %c0_30, %c0_31], %35 {strides = array<i32>} : memref<1x16x8xf32, #tpu.memory_space<vmem>>, vector<1x16x8xf32>,
    return
  }
  func.func @transform_0(%arg0: i32) -> (i32, i32, i32, i32) {
    %c1_i32 = arith.constant 1 : i32
    %c0_i32 = arith.constant 0 : i32
    %c0_i32_0 = arith.constant 0 : i32
    %c0_i32_1 = arith.constant 0 : i32
    return %c1_i32, %arg0, %c0_i32, %c0_i32_0 : i32, i32, i32, i32
  }
  func.func @transform_1(%arg0: i32) -> (i32, i32) {
    %c0_i32 = arith.constant 0 : i32
    %c0_i32_0 = arith.constant 0 : i32
    %c0_i32_1 = arith.constant 0 : i32
    return %c0_i32, %c0_i32_0 : i32, i32
  }
  func.func @transform_2(%arg0: i32) -> (i32, i32) {
    %c0_i32 = arith.constant 0 : i32
    %c0_i32_0 = arith.constant 0 : i32
    %c0_i32_1 = arith.constant 0 : i32
    return %c0_i32, %c0_i32_0 : i32, i32
  }
  func.func @transform_3(%arg0: i32) -> (i32, i32, i32) {
    %c0_i32 = arith.constant 0 : i32
    %c0_i32_0 = arith.constant 0 : i32
    %c0_i32_1 = arith.constant 0 : i32
    return %arg0, %c0_i32, %c0_i32_0 : i32, i32, i32
  }
  func.func @transform_4(%arg0: i32) -> (i32, i32) {
    %c0_i32 = arith.constant 0 : i32
    %c0_i32_0 = arith.constant 0 : i32
    %c0_i32_1 = arith.constant 0 : i32
    return %c0_i32, %c0_i32_0 : i32, i32
  }
  func.func @transform_5(%arg0: i32) -> (i32, i32) {
    %c0_i32 = arith.constant 0 : i32
    %c0_i32_0 = arith.constant 0 : i32
    %c0_i32_1 = arith.constant 0 : i32
    return %c0_i32, %c0_i32_0 : i32, i32
  }
  func.func @transform_6(%arg0: i32) -> (i32, i32) {
    %c0_i32 = arith.constant 0 : i32
    %c0_i32_0 = arith.constant 0 : i32
    %c0_i32_1 = arith.constant 0 : i32
    return %c0_i32, %c0_i32_0 : i32, i32
  }
  func.func @transform_7(%arg0: i32) -> (i32, i32) {
    %c0_i32 = arith.constant 0 : i32
    %c0_i32_0 = arith.constant 0 : i32
    %c0_i32_1 = arith.constant 0 : i32
    return %c0_i32, %c0_i32_0 : i32, i32
  }
  func.func @transform_8(%arg0: i32) -> (i32, i32, i32) {
    %c0_i32 = arith.constant 0 : i32
    %c0_i32_0 = arith.constant 0 : i32
    %c0_i32_1 = arith.constant 0 : i32
    return %arg0, %c0_i32, %c0_i32_0 : i32, i32, i32
  }
}

module attributes {stable_mosaic.version = 11 : i64} {
  func.func @kernel(%arg0: i32, %arg1: memref<1x1x16x8xf32, #tpu.memory_space<vmem>>, %arg2: memref<1x8xf32, #tpu.memory_space<vmem>>, %arg3: memref<1x8xf32, #tpu.memory_space<vmem>>, %arg4: memref<1x16x8xf32, #tpu.memory_space<vmem>>, %arg5: memref<1x8xf32, #tpu.memory_space<vmem>>, %arg6: memref<1x8xf32, #tpu.memory_space<vmem>>, %arg7: memref<24x8xbf16, #tpu.memory_space<vmem>>, %arg8: memref<1x8xf32, #tpu.memory_space<vmem>>, %arg9: memref<1x16x8xf32, #tpu.memory_space<vmem>>, %arg10: memref<20x8xf32, #tpu.memory_space<vmem>>) attributes {dimension_semantics = [#tpu.dimension_semantics<parallel>], iteration_bounds = array<i64: 2>, scalar_prefetch = 0 : i64, scratch_operands = 1 : i64, tpu.core_type = #tpu.core_type<tc>, window_params = [{transform_indices = @transform_0, window_bounds = array<i64: 1, 1, 16, 8>}, {pipeline_mode = #tpu.pipeline_mode<synchronous>, transform_indices = @transform_1, window_bounds = array<i64: 1, 8>}, {pipeline_mode = #tpu.pipeline_mode<synchronous>, transform_indices = @transform_2, window_bounds = array<i64: 1, 8>}, {transform_indices = @transform_3, window_bounds = array<i64: 1, 16, 8>}, {pipeline_mode = #tpu.pipeline_mode<synchronous>, transform_indices = @transform_4, window_bounds = array<i64: 1, 8>}, {pipeline_mode = #tpu.pipeline_mode<synchronous>, transform_indices = @transform_5, window_bounds = array<i64: 1, 8>}, {pipeline_mode = #tpu.pipeline_mode<synchronous>, transform_indices = @transform_6, window_bounds = array<i64: 24, 8>}, {pipeline_mode = #tpu.pipeline_mode<synchronous>, transform_indices = @transform_7, window_bounds = array<i64: 1, 8>}, {transform_indices = @transform_8, window_bounds = array<i64: 1, 16, 8>}]} {
    %c0 = arith.constant 0 : index
    %c0_0 = arith.constant 0 : index
    %c0_1 = arith.constant 0 : index
    %c0_2 = arith.constant 0 : index
    %0 = vector.load %arg1[%c0, %c0_0, %c0_1, %c0_2] : memref<1x1x16x8xf32, #tpu.memory_space<vmem>>, vector<1x1x16x8xf32>
    %1 = vector.shape_cast %0 : vector<1x1x16x8xf32> to vector<16x8xf32>
    %c0_3 = arith.constant 0 : index
    %c0_4 = arith.constant 0 : index
    %2 = vector.load %arg2[%c0_3, %c0_4] : memref<1x8xf32, #tpu.memory_space<vmem>>, vector<1x8xf32>
    %3 = vector.broadcast %2 : vector<1x8xf32> to vector<16x8xf32>
    %4 = arith.mulf %1, %3 : vector<16x8xf32>
    %c0_5 = arith.constant 0 : index
    %c0_6 = arith.constant 0 : index
    %5 = vector.load %arg3[%c0_5, %c0_6] : memref<1x8xf32, #tpu.memory_space<vmem>>, vector<1x8xf32>
    %6 = vector.broadcast %5 : vector<1x8xf32> to vector<16x8xf32>
    %7 = arith.addf %4, %6 : vector<16x8xf32>
    %c0_7 = arith.constant 0 : index
    %c0_8 = arith.constant 0 : index
    %c0_9 = arith.constant 0 : index
    %8 = vector.load %arg4[%c0_7, %c0_8, %c0_9] : memref<1x16x8xf32, #tpu.memory_space<vmem>>, vector<1x16x8xf32>
    %9 = vector.shape_cast %8 : vector<1x16x8xf32> to vector<16x8xf32>
    %c0_10 = arith.constant 0 : index
    %c0_11 = arith.constant 0 : index
    %10 = vector.load %arg5[%c0_10, %c0_11] : memref<1x8xf32, #tpu.memory_space<vmem>>, vector<1x8xf32>
    %11 = vector.broadcast %10 : vector<1x8xf32> to vector<16x8xf32>
    %12 = arith.mulf %9, %11 : vector<16x8xf32>
    %c0_12 = arith.constant 0 : index
    %c0_13 = arith.constant 0 : index
    %13 = vector.load %arg6[%c0_12, %c0_13] : memref<1x8xf32, #tpu.memory_space<vmem>>, vector<1x8xf32>
    %14 = vector.broadcast %13 : vector<1x8xf32> to vector<16x8xf32>
    %15 = arith.addf %12, %14 : vector<16x8xf32>
    %16 = arith.addf %7, %15 : vector<16x8xf32>
    %cst = arith.constant 0.000000e+00 : f32
    %17 = vector.broadcast %cst : f32 to vector<2x8xf32>
    %c0_14 = arith.constant 0 : index
    %c0_15 = arith.constant 0 : index
    %18 = vector.load %arg10[%c0_14, %c0_15] : memref<20x8xf32, #tpu.memory_space<vmem>>, vector<2x8xf32>
    tpu.vector_store %arg10[%c0_14, %c0_15], %17 {strides = array<i32>} : memref<20x8xf32, #tpu.memory_space<vmem>>, vector<2x8xf32>,
    %c18 = arith.constant 18 : index
    %c0_16 = arith.constant 0 : index
    %19 = vector.load %arg10[%c18, %c0_16] : memref<20x8xf32, #tpu.memory_space<vmem>>, vector<2x8xf32>
    tpu.vector_store %arg10[%c18, %c0_16], %17 {strides = array<i32>} : memref<20x8xf32, #tpu.memory_space<vmem>>, vector<2x8xf32>,
    %c2 = arith.constant 2 : index
    %c0_17 = arith.constant 0 : index
    %20 = vector.load %arg10[%c2, %c0_17] : memref<20x8xf32, #tpu.memory_space<vmem>>, vector<16x8xf32>
    tpu.vector_store %arg10[%c2, %c0_17], %16 {strides = array<i32>} : memref<20x8xf32, #tpu.memory_space<vmem>>, vector<16x8xf32>,
    %c0_18 = arith.constant 0 : index
    %c0_19 = arith.constant 0 : index
    %21 = vector.load %arg10[%c0_18, %c0_19] : memref<20x8xf32, #tpu.memory_space<vmem>>, vector<16x8xf32>
    %c2_20 = arith.constant 2 : index
    %c0_21 = arith.constant 0 : index
    %22 = vector.load %arg10[%c2_20, %c0_21] : memref<20x8xf32, #tpu.memory_space<vmem>>, vector<16x8xf32>
    %c4 = arith.constant 4 : index
    %c0_22 = arith.constant 0 : index
    %23 = vector.load %arg10[%c4, %c0_22] : memref<20x8xf32, #tpu.memory_space<vmem>>, vector<16x8xf32>
    %24 = tpu.concatenate %21, %22, %23 in 1 : vector<16x8xf32>, vector<16x8xf32>, vector<16x8xf32> -> vector<16x24xf32>
    %25 = arith.truncf %24 : vector<16x24xf32> to vector<16x24xbf16>
    %c0_23 = arith.constant 0 : index
    %c0_24 = arith.constant 0 : index
    %26 = vector.load %arg7[%c0_23, %c0_24] : memref<24x8xbf16, #tpu.memory_space<vmem>>, vector<24x8xbf16>
    %cst_25 = arith.constant dense<0.000000e+00> : vector<16x8xf32>
    %27 = tpu.matmul %25, %26, %cst_25 {dimension_numbers = #tpu.dot_dimension_numbers<[1], [0], [0], [1], [0, 0, 1, 1], [], []>} : vector<16x24xbf16>, vector<24x8xbf16>, vector<16x8xf32> -> vector<16x8xf32>
    %c0_26 = arith.constant 0 : index
    %c0_27 = arith.constant 0 : index
    %28 = vector.load %arg8[%c0_26, %c0_27] : memref<1x8xf32, #tpu.memory_space<vmem>>, vector<1x8xf32>
    %29 = vector.broadcast %28 : vector<1x8xf32> to vector<16x8xf32>
    %30 = arith.addf %27, %29 : vector<16x8xf32>
    %cst_28 = arith.constant 0.000000e+00 : f32
    %31 = vector.broadcast %cst_28 : f32 to vector<16x8xf32>
    %32 = arith.maximumf %30, %31 : vector<16x8xf32>
    %c0_29 = arith.constant 0 : index
    %c0_30 = arith.constant 0 : index
    %c0_31 = arith.constant 0 : index
    %33 = vector.load %arg9[%c0_29, %c0_30, %c0_31] : memref<1x16x8xf32, #tpu.memory_space<vmem>>, vector<1x16x8xf32>
    %34 = vector.shape_cast %33 : vector<1x16x8xf32> to vector<16x8xf32>
    %35 = vector.shape_cast %32 : vector<16x8xf32> to vector<1x16x8xf32>
    tpu.vector_store %arg9[%c0_29, %c0_30, %c0_31], %35 {strides = array<i32>} : memref<1x16x8xf32, #tpu.memory_space<vmem>>, vector<1x16x8xf32>,
    return
  }
  func.func @transform_0(%arg0: i32) -> (i32, i32, i32, i32) {
    %c2_i32 = arith.constant 2 : i32
    %c0_i32 = arith.constant 0 : i32
    %c0_i32_0 = arith.constant 0 : i32
    %c0_i32_1 = arith.constant 0 : i32
    return %c2_i32, %arg0, %c0_i32, %c0_i32_0 : i32, i32, i32, i32
  }
  func.func @transform_1(%arg0: i32) -> (i32, i32) {
    %c0_i32 = arith.constant 0 : i32
    %c0_i32_0 = arith.constant 0 : i32
    %c0_i32_1 = arith.constant 0 : i32
    return %c0_i32, %c0_i32_0 : i32, i32
  }
  func.func @transform_2(%arg0: i32) -> (i32, i32) {
    %c0_i32 = arith.constant 0 : i32
    %c0_i32_0 = arith.constant 0 : i32
    %c0_i32_1 = arith.constant 0 : i32
    return %c0_i32, %c0_i32_0 : i32, i32
  }
  func.func @transform_3(%arg0: i32) -> (i32, i32, i32) {
    %c0_i32 = arith.constant 0 : i32
    %c0_i32_0 = arith.constant 0 : i32
    %c0_i32_1 = arith.constant 0 : i32
    return %arg0, %c0_i32, %c0_i32_0 : i32, i32, i32
  }
  func.func @transform_4(%arg0: i32) -> (i32, i32) {
    %c0_i32 = arith.constant 0 : i32
    %c0_i32_0 = arith.constant 0 : i32
    %c0_i32_1 = arith.constant 0 : i32
    return %c0_i32, %c0_i32_0 : i32, i32
  }
  func.func @transform_5(%arg0: i32) -> (i32, i32) {
    %c0_i32 = arith.constant 0 : i32
    %c0_i32_0 = arith.constant 0 : i32
    %c0_i32_1 = arith.constant 0 : i32
    return %c0_i32, %c0_i32_0 : i32, i32
  }
  func.func @transform_6(%arg0: i32) -> (i32, i32) {
    %c0_i32 = arith.constant 0 : i32
    %c0_i32_0 = arith.constant 0 : i32
    %c0_i32_1 = arith.constant 0 : i32
    return %c0_i32, %c0_i32_0 : i32, i32
  }
  func.func @transform_7(%arg0: i32) -> (i32, i32) {
    %c0_i32 = arith.constant 0 : i32
    %c0_i32_0 = arith.constant 0 : i32
    %c0_i32_1 = arith.constant 0 : i32
    return %c0_i32, %c0_i32_0 : i32, i32
  }
  func.func @transform_8(%arg0: i32) -> (i32, i32, i32) {
    %c0_i32 = arith.constant 0 : i32
    %c0_i32_0 = arith.constant 0 : i32
    %c0_i32_1 = arith.constant 0 : i32
    return %arg0, %c0_i32, %c0_i32_0 : i32, i32, i32
  }
}

module attributes {stable_mosaic.version = 11 : i64} {
  func.func @kernel(%arg0: i32, %arg1: memref<1x1x16x8xf32, #tpu.memory_space<vmem>>, %arg2: memref<1x8xf32, #tpu.memory_space<vmem>>, %arg3: memref<1x8xf32, #tpu.memory_space<vmem>>, %arg4: memref<1x16x8xf32, #tpu.memory_space<vmem>>, %arg5: memref<1x16x8xf32, #tpu.memory_space<vmem>>, %arg6: memref<1x16x8xf32, #tpu.memory_space<vmem>>, %arg7: memref<1x8xf32, #tpu.memory_space<vmem>>, %arg8: memref<1x8xf32, #tpu.memory_space<vmem>>, %arg9: memref<1x8xf32, #tpu.memory_space<vmem>>, %arg10: memref<1x8xf32, #tpu.memory_space<vmem>>, %arg11: memref<1x8xf32, #tpu.memory_space<vmem>>, %arg12: memref<1x8xf32, #tpu.memory_space<vmem>>, %arg13: memref<4x8x32xbf16, #tpu.memory_space<vmem>>, %arg14: memref<1x32xf32, #tpu.memory_space<vmem>>, %arg15: memref<1x16x32xf32, #tpu.memory_space<vmem>>) attributes {dimension_semantics = [#tpu.dimension_semantics<parallel>], iteration_bounds = array<i64: 2>, scalar_prefetch = 0 : i64, scratch_operands = 0 : i64, tpu.core_type = #tpu.core_type<tc>, window_params = [{transform_indices = @transform_0, window_bounds = array<i64: 1, 1, 16, 8>}, {pipeline_mode = #tpu.pipeline_mode<synchronous>, transform_indices = @transform_1, window_bounds = array<i64: 1, 8>}, {pipeline_mode = #tpu.pipeline_mode<synchronous>, transform_indices = @transform_2, window_bounds = array<i64: 1, 8>}, {transform_indices = @transform_3, window_bounds = array<i64: 1, 16, 8>}, {transform_indices = @transform_4, window_bounds = array<i64: 1, 16, 8>}, {transform_indices = @transform_5, window_bounds = array<i64: 1, 16, 8>}, {pipeline_mode = #tpu.pipeline_mode<synchronous>, transform_indices = @transform_6, window_bounds = array<i64: 1, 8>}, {pipeline_mode = #tpu.pipeline_mode<synchronous>, transform_indices = @transform_7, window_bounds = array<i64: 1, 8>}, {pipeline_mode = #tpu.pipeline_mode<synchronous>, transform_indices = @transform_8, window_bounds = array<i64: 1, 8>}, {pipeline_mode = #tpu.pipeline_mode<synchronous>, transform_indices = @transform_9, window_bounds = array<i64: 1, 8>}, {pipeline_mode = #tpu.pipeline_mode<synchronous>, transform_indices = @transform_10, window_bounds = array<i64: 1, 8>}, {pipeline_mode = #tpu.pipeline_mode<synchronous>, transform_indices = @transform_11, window_bounds = array<i64: 1, 8>}, {pipeline_mode = #tpu.pipeline_mode<synchronous>, transform_indices = @transform_12, window_bounds = array<i64: 4, 8, 32>}, {pipeline_mode = #tpu.pipeline_mode<synchronous>, transform_indices = @transform_13, window_bounds = array<i64: 1, 32>}, {transform_indices = @transform_14, window_bounds = array<i64: 1, 16, 32>}]} {
    %c0 = arith.constant 0 : index
    %c0_0 = arith.constant 0 : index
    %c0_1 = arith.constant 0 : index
    %c0_2 = arith.constant 0 : index
    %0 = vector.load %arg1[%c0, %c0_0, %c0_1, %c0_2] : memref<1x1x16x8xf32, #tpu.memory_space<vmem>>, vector<1x1x16x8xf32>
    %1 = vector.shape_cast %0 : vector<1x1x16x8xf32> to vector<16x8xf32>
    %c0_3 = arith.constant 0 : index
    %c0_4 = arith.constant 0 : index
    %2 = vector.load %arg2[%c0_3, %c0_4] : memref<1x8xf32, #tpu.memory_space<vmem>>, vector<1x8xf32>
    %3 = vector.broadcast %2 : vector<1x8xf32> to vector<16x8xf32>
    %4 = arith.mulf %1, %3 : vector<16x8xf32>
    %c0_5 = arith.constant 0 : index
    %c0_6 = arith.constant 0 : index
    %5 = vector.load %arg3[%c0_5, %c0_6] : memref<1x8xf32, #tpu.memory_space<vmem>>, vector<1x8xf32>
    %6 = vector.broadcast %5 : vector<1x8xf32> to vector<16x8xf32>
    %7 = arith.addf %4, %6 : vector<16x8xf32>
    %8 = arith.truncf %7 : vector<16x8xf32> to vector<16x8xbf16>
    %c3 = arith.constant 3 : index
    %c0_7 = arith.constant 0 : index
    %c0_8 = arith.constant 0 : index
    %9 = vector.load %arg13[%c3, %c0_7, %c0_8] : memref<4x8x32xbf16, #tpu.memory_space<vmem>>, vector<1x8x32xbf16>
    %10 = vector.shape_cast %9 : vector<1x8x32xbf16> to vector<8x32xbf16>
    %cst = arith.constant dense<0.000000e+00> : vector<16x32xf32>
    %11 = tpu.matmul %8, %10, %cst {dimension_numbers = #tpu.dot_dimension_numbers<[1], [0], [0], [1], [0, 0, 1, 1], [], []>} : vector<16x8xbf16>, vector<8x32xbf16>, vector<16x32xf32> -> vector<16x32xf32>
    %c0_9 = arith.constant 0 : index
    %c0_10 = arith.constant 0 : index
    %c0_11 = arith.constant 0 : index
    %12 = vector.load %arg4[%c0_9, %c0_10, %c0_11] : memref<1x16x8xf32, #tpu.memory_space<vmem>>, vector<1x16x8xf32>
    %13 = vector.shape_cast %12 : vector<1x16x8xf32> to vector<16x8xf32>
    %c0_12 = arith.constant 0 : index
    %c0_13 = arith.constant 0 : index
    %14 = vector.load %arg7[%c0_12, %c0_13] : memref<1x8xf32, #tpu.memory_space<vmem>>, vector<1x8xf32>
    %15 = vector.broadcast %14 : vector<1x8xf32> to vector<16x8xf32>
    %16 = arith.mulf %13, %15 : vector<16x8xf32>
    %c0_14 = arith.constant 0 : index
    %c0_15 = arith.constant 0 : index
    %17 = vector.load %arg10[%c0_14, %c0_15] : memref<1x8xf32, #tpu.memory_space<vmem>>, vector<1x8xf32>
    %18 = vector.broadcast %17 : vector<1x8xf32> to vector<16x8xf32>
    %19 = arith.addf %16, %18 : vector<16x8xf32>
    %20 = arith.truncf %19 : vector<16x8xf32> to vector<16x8xbf16>
    %c0_16 = arith.constant 0 : index
    %c0_17 = arith.constant 0 : index
    %c0_18 = arith.constant 0 : index
    %21 = vector.load %arg13[%c0_16, %c0_17, %c0_18] : memref<4x8x32xbf16, #tpu.memory_space<vmem>>, vector<1x8x32xbf16>
    %22 = vector.shape_cast %21 : vector<1x8x32xbf16> to vector<8x32xbf16>
    %cst_19 = arith.constant dense<0.000000e+00> : vector<16x32xf32>
    %23 = tpu.matmul %20, %22, %cst_19 {dimension_numbers = #tpu.dot_dimension_numbers<[1], [0], [0], [1], [0, 0, 1, 1], [], []>} : vector<16x8xbf16>, vector<8x32xbf16>, vector<16x32xf32> -> vector<16x32xf32>
    %24 = arith.addf %11, %23 : vector<16x32xf32>
    %c0_20 = arith.constant 0 : index
    %c0_21 = arith.constant 0 : index
    %c0_22 = arith.constant 0 : index
    %25 = vector.load %arg5[%c0_20, %c0_21, %c0_22] : memref<1x16x8xf32, #tpu.memory_space<vmem>>, vector<1x16x8xf32>
    %26 = vector.shape_cast %25 : vector<1x16x8xf32> to vector<16x8xf32>
    %c0_23 = arith.constant 0 : index
    %c0_24 = arith.constant 0 : index
    %27 = vector.load %arg8[%c0_23, %c0_24] : memref<1x8xf32, #tpu.memory_space<vmem>>, vector<1x8xf32>
    %28 = vector.broadcast %27 : vector<1x8xf32> to vector<16x8xf32>
    %29 = arith.mulf %26, %28 : vector<16x8xf32>
    %c0_25 = arith.constant 0 : index
    %c0_26 = arith.constant 0 : index
    %30 = vector.load %arg11[%c0_25, %c0_26] : memref<1x8xf32, #tpu.memory_space<vmem>>, vector<1x8xf32>
    %31 = vector.broadcast %30 : vector<1x8xf32> to vector<16x8xf32>
    %32 = arith.addf %29, %31 : vector<16x8xf32>
    %33 = arith.truncf %32 : vector<16x8xf32> to vector<16x8xbf16>
    %c1 = arith.constant 1 : index
    %c0_27 = arith.constant 0 : index
    %c0_28 = arith.constant 0 : index
    %34 = vector.load %arg13[%c1, %c0_27, %c0_28] : memref<4x8x32xbf16, #tpu.memory_space<vmem>>, vector<1x8x32xbf16>
    %35 = vector.shape_cast %34 : vector<1x8x32xbf16> to vector<8x32xbf16>
    %cst_29 = arith.constant dense<0.000000e+00> : vector<16x32xf32>
    %36 = tpu.matmul %33, %35, %cst_29 {dimension_numbers = #tpu.dot_dimension_numbers<[1], [0], [0], [1], [0, 0, 1, 1], [], []>} : vector<16x8xbf16>, vector<8x32xbf16>, vector<16x32xf32> -> vector<16x32xf32>
    %37 = arith.addf %24, %36 : vector<16x32xf32>
    %c0_30 = arith.constant 0 : index
    %c0_31 = arith.constant 0 : index
    %c0_32 = arith.constant 0 : index
    %38 = vector.load %arg6[%c0_30, %c0_31, %c0_32] : memref<1x16x8xf32, #tpu.memory_space<vmem>>, vector<1x16x8xf32>
    %39 = vector.shape_cast %38 : vector<1x16x8xf32> to vector<16x8xf32>
    %c0_33 = arith.constant 0 : index
    %c0_34 = arith.constant 0 : index
    %40 = vector.load %arg9[%c0_33, %c0_34] : memref<1x8xf32, #tpu.memory_space<vmem>>, vector<1x8xf32>
    %41 = vector.broadcast %40 : vector<1x8xf32> to vector<16x8xf32>
    %42 = arith.mulf %39, %41 : vector<16x8xf32>
    %c0_35 = arith.constant 0 : index
    %c0_36 = arith.constant 0 : index
    %43 = vector.load %arg12[%c0_35, %c0_36] : memref<1x8xf32, #tpu.memory_space<vmem>>, vector<1x8xf32>
    %44 = vector.broadcast %43 : vector<1x8xf32> to vector<16x8xf32>
    %45 = arith.addf %42, %44 : vector<16x8xf32>
    %46 = arith.truncf %45 : vector<16x8xf32> to vector<16x8xbf16>
    %c2 = arith.constant 2 : index
    %c0_37 = arith.constant 0 : index
    %c0_38 = arith.constant 0 : index
    %47 = vector.load %arg13[%c2, %c0_37, %c0_38] : memref<4x8x32xbf16, #tpu.memory_space<vmem>>, vector<1x8x32xbf16>
    %48 = vector.shape_cast %47 : vector<1x8x32xbf16> to vector<8x32xbf16>
    %cst_39 = arith.constant dense<0.000000e+00> : vector<16x32xf32>
    %49 = tpu.matmul %46, %48, %cst_39 {dimension_numbers = #tpu.dot_dimension_numbers<[1], [0], [0], [1], [0, 0, 1, 1], [], []>} : vector<16x8xbf16>, vector<8x32xbf16>, vector<16x32xf32> -> vector<16x32xf32>
    %50 = arith.addf %37, %49 : vector<16x32xf32>
    %c0_40 = arith.constant 0 : index
    %c0_41 = arith.constant 0 : index
    %51 = vector.load %arg14[%c0_40, %c0_41] : memref<1x32xf32, #tpu.memory_space<vmem>>, vector<1x32xf32>
    %52 = vector.broadcast %51 : vector<1x32xf32> to vector<16x32xf32>
    %53 = arith.addf %50, %52 : vector<16x32xf32>
    %cst_42 = arith.constant 0.000000e+00 : f32
    %54 = vector.broadcast %cst_42 : f32 to vector<16x32xf32>
    %55 = arith.maximumf %53, %54 : vector<16x32xf32>
    %c0_43 = arith.constant 0 : index
    %c0_44 = arith.constant 0 : index
    %c0_45 = arith.constant 0 : index
    %56 = vector.load %arg15[%c0_43, %c0_44, %c0_45] : memref<1x16x32xf32, #tpu.memory_space<vmem>>, vector<1x16x32xf32>
    %57 = vector.shape_cast %56 : vector<1x16x32xf32> to vector<16x32xf32>
    %58 = vector.shape_cast %55 : vector<16x32xf32> to vector<1x16x32xf32>
    tpu.vector_store %arg15[%c0_43, %c0_44, %c0_45], %58 {strides = array<i32>} : memref<1x16x32xf32, #tpu.memory_space<vmem>>, vector<1x16x32xf32>,
    return
  }
  func.func @transform_0(%arg0: i32) -> (i32, i32, i32, i32) {
    %c3_i32 = arith.constant 3 : i32
    %c0_i32 = arith.constant 0 : i32
    %c0_i32_0 = arith.constant 0 : i32
    %c0_i32_1 = arith.constant 0 : i32
    return %c3_i32, %arg0, %c0_i32, %c0_i32_0 : i32, i32, i32, i32
  }
  func.func @transform_1(%arg0: i32) -> (i32, i32) {
    %c0_i32 = arith.constant 0 : i32
    %c0_i32_0 = arith.constant 0 : i32
    %c0_i32_1 = arith.constant 0 : i32
    return %c0_i32, %c0_i32_0 : i32, i32
  }
  func.func @transform_2(%arg0: i32) -> (i32, i32) {
    %c0_i32 = arith.constant 0 : i32
    %c0_i32_0 = arith.constant 0 : i32
    %c0_i32_1 = arith.constant 0 : i32
    return %c0_i32, %c0_i32_0 : i32, i32
  }
  func.func @transform_3(%arg0: i32) -> (i32, i32, i32) {
    %c0_i32 = arith.constant 0 : i32
    %c0_i32_0 = arith.constant 0 : i32
    %c0_i32_1 = arith.constant 0 : i32
    return %arg0, %c0_i32, %c0_i32_0 : i32, i32, i32
  }
  func.func @transform_4(%arg0: i32) -> (i32, i32, i32) {
    %c0_i32 = arith.constant 0 : i32
    %c0_i32_0 = arith.constant 0 : i32
    %c0_i32_1 = arith.constant 0 : i32
    return %arg0, %c0_i32, %c0_i32_0 : i32, i32, i32
  }
  func.func @transform_5(%arg0: i32) -> (i32, i32, i32) {
    %c0_i32 = arith.constant 0 : i32
    %c0_i32_0 = arith.constant 0 : i32
    %c0_i32_1 = arith.constant 0 : i32
    return %arg0, %c0_i32, %c0_i32_0 : i32, i32, i32
  }
  func.func @transform_6(%arg0: i32) -> (i32, i32) {
    %c0_i32 = arith.constant 0 : i32
    %c0_i32_0 = arith.constant 0 : i32
    %c0_i32_1 = arith.constant 0 : i32
    return %c0_i32, %c0_i32_0 : i32, i32
  }
  func.func @transform_7(%arg0: i32) -> (i32, i32) {
    %c0_i32 = arith.constant 0 : i32
    %c0_i32_0 = arith.constant 0 : i32
    %c0_i32_1 = arith.constant 0 : i32
    return %c0_i32, %c0_i32_0 : i32, i32
  }
  func.func @transform_8(%arg0: i32) -> (i32, i32) {
    %c0_i32 = arith.constant 0 : i32
    %c0_i32_0 = arith.constant 0 : i32
    %c0_i32_1 = arith.constant 0 : i32
    return %c0_i32, %c0_i32_0 : i32, i32
  }
  func.func @transform_9(%arg0: i32) -> (i32, i32) {
    %c0_i32 = arith.constant 0 : i32
    %c0_i32_0 = arith.constant 0 : i32
    %c0_i32_1 = arith.constant 0 : i32
    return %c0_i32, %c0_i32_0 : i32, i32
  }
  func.func @transform_10(%arg0: i32) -> (i32, i32) {
    %c0_i32 = arith.constant 0 : i32
    %c0_i32_0 = arith.constant 0 : i32
    %c0_i32_1 = arith.constant 0 : i32
    return %c0_i32, %c0_i32_0 : i32, i32
  }
  func.func @transform_11(%arg0: i32) -> (i32, i32) {
    %c0_i32 = arith.constant 0 : i32
    %c0_i32_0 = arith.constant 0 : i32
    %c0_i32_1 = arith.constant 0 : i32
    return %c0_i32, %c0_i32_0 : i32, i32
  }
  func.func @transform_12(%arg0: i32) -> (i32, i32, i32) {
    %c0_i32 = arith.constant 0 : i32
    %c0_i32_0 = arith.constant 0 : i32
    %c0_i32_1 = arith.constant 0 : i32
    %c0_i32_2 = arith.constant 0 : i32
    return %c0_i32, %c0_i32_0, %c0_i32_1 : i32, i32, i32
  }
  func.func @transform_13(%arg0: i32) -> (i32, i32) {
    %c0_i32 = arith.constant 0 : i32
    %c0_i32_0 = arith.constant 0 : i32
    %c0_i32_1 = arith.constant 0 : i32
    return %c0_i32, %c0_i32_0 : i32, i32
  }
  func.func @transform_14(%arg0: i32) -> (i32, i32, i32) {
    %c0_i32 = arith.constant 0 : i32
    %c0_i32_0 = arith.constant 0 : i32
    %c0_i32_1 = arith.constant 0 : i32
    return %arg0, %c0_i32, %c0_i32_0 : i32, i32, i32
  }
}

module attributes {stable_mosaic.version = 11 : i64} {
  func.func @kernel(%arg0: i32, %arg1: memref<1x16x32xf32, #tpu.memory_space<vmem>>, %arg2: memref<1x32xf32, #tpu.memory_space<vmem>>, %arg3: memref<1x32xf32, #tpu.memory_space<vmem>>, %arg4: memref<32x128xbf16, #tpu.memory_space<vmem>>, %arg5: memref<1x128xf32, #tpu.memory_space<vmem>>, %arg6: memref<128x32xbf16, #tpu.memory_space<vmem>>, %arg7: memref<1x32xf32, #tpu.memory_space<vmem>>, %arg8: memref<1x16x16xf32, #tpu.memory_space<vmem>>, %arg9: memref<16x32xbf16, #tpu.memory_space<vmem>>, %arg10: memref<1x32xf32, #tpu.memory_space<vmem>>, %arg11: memref<1x16x32xf32, #tpu.memory_space<vmem>>) attributes {dimension_semantics = [#tpu.dimension_semantics<parallel>], iteration_bounds = array<i64: 2>, scalar_prefetch = 0 : i64, scratch_operands = 0 : i64, tpu.core_type = #tpu.core_type<tc>, window_params = [{transform_indices = @transform_0, window_bounds = array<i64: 1, 16, 32>}, {pipeline_mode = #tpu.pipeline_mode<synchronous>, transform_indices = @transform_1, window_bounds = array<i64: 1, 32>}, {pipeline_mode = #tpu.pipeline_mode<synchronous>, transform_indices = @transform_2, window_bounds = array<i64: 1, 32>}, {pipeline_mode = #tpu.pipeline_mode<synchronous>, transform_indices = @transform_3, window_bounds = array<i64: 32, 128>}, {pipeline_mode = #tpu.pipeline_mode<synchronous>, transform_indices = @transform_4, window_bounds = array<i64: 1, 128>}, {pipeline_mode = #tpu.pipeline_mode<synchronous>, transform_indices = @transform_5, window_bounds = array<i64: 128, 32>}, {pipeline_mode = #tpu.pipeline_mode<synchronous>, transform_indices = @transform_6, window_bounds = array<i64: 1, 32>}, {transform_indices = @transform_7, window_bounds = array<i64: 1, 16, 16>}, {pipeline_mode = #tpu.pipeline_mode<synchronous>, transform_indices = @transform_8, window_bounds = array<i64: 16, 32>}, {pipeline_mode = #tpu.pipeline_mode<synchronous>, transform_indices = @transform_9, window_bounds = array<i64: 1, 32>}, {transform_indices = @transform_10, window_bounds = array<i64: 1, 16, 32>}]} {
    %c0 = arith.constant 0 : index
    %c0_0 = arith.constant 0 : index
    %c0_1 = arith.constant 0 : index
    %0 = vector.load %arg1[%c0, %c0_0, %c0_1] : memref<1x16x32xf32, #tpu.memory_space<vmem>>, vector<1x16x32xf32>
    %1 = vector.shape_cast %0 : vector<1x16x32xf32> to vector<16x32xf32>
    %c0_2 = arith.constant 0 : index
    %c0_3 = arith.constant 0 : index
    %2 = vector.load %arg2[%c0_2, %c0_3] : memref<1x32xf32, #tpu.memory_space<vmem>>, vector<1x32xf32>
    %3 = vector.broadcast %2 : vector<1x32xf32> to vector<16x32xf32>
    %4 = arith.mulf %1, %3 : vector<16x32xf32>
    %c0_4 = arith.constant 0 : index
    %c0_5 = arith.constant 0 : index
    %5 = vector.load %arg3[%c0_4, %c0_5] : memref<1x32xf32, #tpu.memory_space<vmem>>, vector<1x32xf32>
    %6 = vector.broadcast %5 : vector<1x32xf32> to vector<16x32xf32>
    %7 = arith.addf %4, %6 : vector<16x32xf32>
    %cst = arith.constant dense<0.000000e+00> : vector<32xf32>
    %8 = vector.multi_reduction <add>, %7, %cst [0] : vector<16x32xf32> to vector<32xf32>
    %9 = vector.shape_cast %8 : vector<32xf32> to vector<1x32xf32>
    %cst_6 = arith.constant 6.250000e-02 : f32
    %10 = vector.broadcast %cst_6 : f32 to vector<1x32xf32>
    %11 = arith.mulf %9, %10 : vector<1x32xf32>
    %12 = arith.truncf %11 : vector<1x32xf32> to vector<1x32xbf16>
    %c0_7 = arith.constant 0 : index
    %c0_8 = arith.constant 0 : index
    %13 = vector.load %arg4[%c0_7, %c0_8] : memref<32x128xbf16, #tpu.memory_space<vmem>>, vector<32x128xbf16>
    %cst_9 = arith.constant dense<0.000000e+00> : vector<1x128xf32>
    %14 = tpu.matmul %12, %13, %cst_9 {dimension_numbers = #tpu.dot_dimension_numbers<[1], [0], [0], [1], [0, 0, 1, 1], [], []>} : vector<1x32xbf16>, vector<32x128xbf16>, vector<1x128xf32> -> vector<1x128xf32>
    %c0_10 = arith.constant 0 : index
    %c0_11 = arith.constant 0 : index
    %15 = vector.load %arg5[%c0_10, %c0_11] : memref<1x128xf32, #tpu.memory_space<vmem>>, vector<1x128xf32>
    %16 = arith.addf %14, %15 : vector<1x128xf32>
    %cst_12 = arith.constant 0.000000e+00 : f32
    %17 = vector.broadcast %cst_12 : f32 to vector<1x128xf32>
    %18 = arith.maximumf %16, %17 : vector<1x128xf32>
    %19 = arith.truncf %18 : vector<1x128xf32> to vector<1x128xbf16>
    %c0_13 = arith.constant 0 : index
    %c0_14 = arith.constant 0 : index
    %20 = vector.load %arg6[%c0_13, %c0_14] : memref<128x32xbf16, #tpu.memory_space<vmem>>, vector<128x32xbf16>
    %cst_15 = arith.constant dense<0.000000e+00> : vector<1x32xf32>
    %21 = tpu.matmul %19, %20, %cst_15 {dimension_numbers = #tpu.dot_dimension_numbers<[1], [0], [0], [1], [0, 0, 1, 1], [], []>} : vector<1x128xbf16>, vector<128x32xbf16>, vector<1x32xf32> -> vector<1x32xf32>
    %c0_16 = arith.constant 0 : index
    %c0_17 = arith.constant 0 : index
    %22 = vector.load %arg7[%c0_16, %c0_17] : memref<1x32xf32, #tpu.memory_space<vmem>>, vector<1x32xf32>
    %23 = arith.addf %21, %22 : vector<1x32xf32>
    %24 = arith.negf %23 : vector<1x32xf32>
    %25 = math.exp %24 : vector<1x32xf32>
    %cst_18 = arith.constant 1.000000e+00 : f32
    %26 = vector.broadcast %cst_18 : f32 to vector<1x32xf32>
    %27 = arith.addf %26, %25 : vector<1x32xf32>
    %28 = arith.divf %26, %27 : vector<1x32xf32>
    %c0_19 = arith.constant 0 : index
    %c0_20 = arith.constant 0 : index
    %c0_21 = arith.constant 0 : index
    %29 = vector.load %arg8[%c0_19, %c0_20, %c0_21] : memref<1x16x16xf32, #tpu.memory_space<vmem>>, vector<1x16x16xf32>
    %30 = vector.shape_cast %29 : vector<1x16x16xf32> to vector<16x16xf32>
    %31 = arith.truncf %30 : vector<16x16xf32> to vector<16x16xbf16>
    %c0_22 = arith.constant 0 : index
    %c0_23 = arith.constant 0 : index
    %32 = vector.load %arg9[%c0_22, %c0_23] : memref<16x32xbf16, #tpu.memory_space<vmem>>, vector<16x32xbf16>
    %cst_24 = arith.constant dense<0.000000e+00> : vector<16x32xf32>
    %33 = tpu.matmul %31, %32, %cst_24 {dimension_numbers = #tpu.dot_dimension_numbers<[1], [0], [0], [1], [0, 0, 1, 1], [], []>} : vector<16x16xbf16>, vector<16x32xbf16>, vector<16x32xf32> -> vector<16x32xf32>
    %c0_25 = arith.constant 0 : index
    %c0_26 = arith.constant 0 : index
    %34 = vector.load %arg10[%c0_25, %c0_26] : memref<1x32xf32, #tpu.memory_space<vmem>>, vector<1x32xf32>
    %35 = vector.broadcast %34 : vector<1x32xf32> to vector<16x32xf32>
    %36 = arith.addf %33, %35 : vector<16x32xf32>
    %37 = vector.broadcast %28 : vector<1x32xf32> to vector<16x32xf32>
    %38 = arith.mulf %7, %37 : vector<16x32xf32>
    %39 = arith.addf %38, %36 : vector<16x32xf32>
    %c0_27 = arith.constant 0 : index
    %c0_28 = arith.constant 0 : index
    %c0_29 = arith.constant 0 : index
    %40 = vector.load %arg11[%c0_27, %c0_28, %c0_29] : memref<1x16x32xf32, #tpu.memory_space<vmem>>, vector<1x16x32xf32>
    %41 = vector.shape_cast %40 : vector<1x16x32xf32> to vector<16x32xf32>
    %42 = vector.shape_cast %39 : vector<16x32xf32> to vector<1x16x32xf32>
    tpu.vector_store %arg11[%c0_27, %c0_28, %c0_29], %42 {strides = array<i32>} : memref<1x16x32xf32, #tpu.memory_space<vmem>>, vector<1x16x32xf32>,
    return
  }
  func.func @transform_0(%arg0: i32) -> (i32, i32, i32) {
    %c0_i32 = arith.constant 0 : i32
    %c0_i32_0 = arith.constant 0 : i32
    %c0_i32_1 = arith.constant 0 : i32
    return %arg0, %c0_i32, %c0_i32_0 : i32, i32, i32
  }
  func.func @transform_1(%arg0: i32) -> (i32, i32) {
    %c0_i32 = arith.constant 0 : i32
    %c0_i32_0 = arith.constant 0 : i32
    %c0_i32_1 = arith.constant 0 : i32
    return %c0_i32, %c0_i32_0 : i32, i32
  }
  func.func @transform_2(%arg0: i32) -> (i32, i32) {
    %c0_i32 = arith.constant 0 : i32
    %c0_i32_0 = arith.constant 0 : i32
    %c0_i32_1 = arith.constant 0 : i32
    return %c0_i32, %c0_i32_0 : i32, i32
  }
  func.func @transform_3(%arg0: i32) -> (i32, i32) {
    %c0_i32 = arith.constant 0 : i32
    %c0_i32_0 = arith.constant 0 : i32
    %c0_i32_1 = arith.constant 0 : i32
    return %c0_i32, %c0_i32_0 : i32, i32
  }
  func.func @transform_4(%arg0: i32) -> (i32, i32) {
    %c0_i32 = arith.constant 0 : i32
    %c0_i32_0 = arith.constant 0 : i32
    %c0_i32_1 = arith.constant 0 : i32
    return %c0_i32, %c0_i32_0 : i32, i32
  }
  func.func @transform_5(%arg0: i32) -> (i32, i32) {
    %c0_i32 = arith.constant 0 : i32
    %c0_i32_0 = arith.constant 0 : i32
    %c0_i32_1 = arith.constant 0 : i32
    return %c0_i32, %c0_i32_0 : i32, i32
  }
  func.func @transform_6(%arg0: i32) -> (i32, i32) {
    %c0_i32 = arith.constant 0 : i32
    %c0_i32_0 = arith.constant 0 : i32
    %c0_i32_1 = arith.constant 0 : i32
    return %c0_i32, %c0_i32_0 : i32, i32
  }
  func.func @transform_7(%arg0: i32) -> (i32, i32, i32) {
    %c0_i32 = arith.constant 0 : i32
    %c0_i32_0 = arith.constant 0 : i32
    %c0_i32_1 = arith.constant 0 : i32
    return %arg0, %c0_i32, %c0_i32_0 : i32, i32, i32
  }
  func.func @transform_8(%arg0: i32) -> (i32, i32) {
    %c0_i32 = arith.constant 0 : i32
    %c0_i32_0 = arith.constant 0 : i32
    %c0_i32_1 = arith.constant 0 : i32
    return %c0_i32, %c0_i32_0 : i32, i32
  }
  func.func @transform_9(%arg0: i32) -> (i32, i32) {
    %c0_i32 = arith.constant 0 : i32
    %c0_i32_0 = arith.constant 0 : i32
    %c0_i32_1 = arith.constant 0 : i32
    return %c0_i32, %c0_i32_0 : i32, i32
  }
  func.func @transform_10(%arg0: i32) -> (i32, i32, i32) {
    %c0_i32 = arith.constant 0 : i32
    %c0_i32_0 = arith.constant 0 : i32
    %c0_i32_1 = arith.constant 0 : i32
    return %arg0, %c0_i32, %c0_i32_0 : i32, i32, i32
  }
}

</mosaic_0001>

<bundles_post_ra>
// kernel: bottle2neck_forward.6
= control target key start
LH: loop header
LB: loop body
LE: loop exit
PB: predicated region body
PF: predicated region fallthrough
CT: control target
= control target key end

     0   :  { %s694_s12 = smov 0   ;;  %s696_s13 = smov 0   ;;  %s799_s0 = inlined_call_operand.vmem [shape: f32[2,16,16], index: 0, kind: input, shape index: {}]   ;;  %s800_s1 = inlined_call_operand.vmem [shape: bf16[4,16,8], index: 1, kind: input, shape index: {}]   ;;  %s801_s2 = inlined_call_operand.vmem [shape: f32[4,1,8], index: 2, kind: input, shape index: {}]   ;;  %s802_s3 = inlined_call_operand.vmem [shape: f32[4,2,16,8], index: 3, kind: output, shape index: {}]  }
   0x1   :  { %s698_s14 = smov 0  }
   0x2 LB: > { %s707_s15 = sadd.s32 4294967295, %s670_s14   ;;  %s709_s16 = sadd.s32 1, %s670_s14   ;;  %s670_s14 = sphi %s698_s14, %s806_s14   ;;  %s666_s13 = sphi %s696_s13, %s805_s13   ;;  %s662_s12 = sphi %s694_s12, %s804_s12  }
   0x3   : > { %s85_s17 = ssub.s32 %s670_s14, %s709_s16  ;;  %s88_s18 = sadd.s32 1, %s666_s13 }
   0x4   : > { %p86_p0 = scmp.eq.s32.totalorder %s85_s17, 0  ;;  %p98_p1 = scmp.ne.s32.totalorder %s666_s13, %s662_s12 }
   0x5   : > { %p99_p2 = scmp.eq.s32.totalorder %s707_s15, 1  ;;  %p548_p3 = scmp.ge.s32.totalorder %s670_s14, 1 }
   0x6   : > { %s717_s19 = scalar_select %p86_p0, %s666_s13, %s88_s18  }
   0x7   : > { %p719_p4 = por %p99_p2, %p98_p1  ;;  %p137_p5 = scmp.lt.s32.totalorder %s670_s14, 3 }
   0x9   : > { %p138_p6 = pnand %p548_p3, %p137_p5 }
   0xa   : > { %p160_p7 = scmp.lt.s32.totalorder (!%p138_p6), %s707_s15, 1  ;;  %s157_s7 = sand.u32 (!%p138_p6), 1, %s662_s12  }
   0xb   : > { %141 = sbr.rel (%p138_p6) target bundleno = 241 (0xf1), region = 32  ;;  %s549_s14 = sshll.u32 (!%p138_p6), %s157_s7, 6 }
   0xc   : > { %s751_s12 = scalar_lea.vmem (!%p138_p6), [#allocation2], %s549_s14 }
  0x10   : > { %v644_v0 = vld [vmem:[%s800_s1] sm:$0xff]   ;;  %v672_v1 = vmov 0.0   ;;  %v645_v2 = vld [vmem:[%s800_s1 + $0x8] sm:$0xff]   ;;  %vm673_vm0 = vmmov 0   ;;  %s161_s25 = scalar_select %p160_p7, %s707_s15, 1  ;;  %v646_v3 = vld [vmem:[%s800_s1 + $0x10] sm:$0xff]  }
  0x11   : > { %594 = vmatprep.subr.bf16.mxu0 %v672_v1  ;;  %600 = vmatprep.subr.bf16.mxu1 %v672_v1  ;;  %vm184_vm1 = vcmask 130048   ;;  %v647_v6 = vld [vmem:[%s800_s1 + $0x18] sm:$0xff]   ;;  %v552_v8 = vld [vmem:[%s801_s2] ss:$0 sm:$0xff]  ;;  %v558_v9 = vld [vmem:[%s801_s2 + $0x1] ss:$0 sm:$0xff] }
  0x12   : > { %595 = vmatpush3.bf16.msra.mxu0 %v644_v0  ;;  %596 = vmatprep.mubr.msk.bf16.mxu0 %vm673_vm0, %v672_v1  ;;  %s584_s26 = sshll.u32 %s161_s25, 4  ;;  %vm231_vm2 = vcmask 64512   ;;  %v566_v24 = vld [vmem:[%s801_s2 + $0x2] ss:$0 sm:$0xff]  ;;  %v574_v25 = vld [vmem:[%s801_s2 + $0x3] ss:$0 sm:$0xff] }
  0x13   : > { %601 = vmatpush3.bf16.msra.mxu1 %v645_v2  ;;  %602 = vmatprep.mubr.msk.bf16.mxu1 %vm673_vm0, %v672_v1  ;;  %s164_s29 = scalar_lea.vmem %s799_s0, %s584_s26  ;;  %s585_s23 = sshll.u32 (%p719_p4), %s707_s15, 4 }
  0x14   : > { %606 = vmatprep.subr.bf16.mxu0 %v672_v1  ;;  %612 = vmatprep.subr.bf16.mxu1 %v672_v1  ;;  %v166_v4 = vld [vmem:[%s164_s29] sm:$0xff]  ;;  %v167_v5 = vld [vmem:[%s164_s29 + $0x8] sm:$0xff]  ;;  %s432_s26 = scalar_lea.vmem (%p719_p4), %s802_s3, %s585_s23 }
  0x15   : > { %v168_v7 = vpack.c.bf16 %v167_v5, %v166_v4 }
  0x17   : > { %597 = vmatmul.mubr.msk.bf16.vlgmr.msra.gmra.mxu0 %vm184_vm1, %v168_v7  ;;  %603 = vmatmul.mubr.msk.bf16.vlgmr.msra.gmra.mxu1 %vm184_vm1, %v168_v7 }
  0x18   : > { %607 = vmatpush3.bf16.msra.mxu0 %v646_v3  ;;  %613 = vmatpush3.bf16.msra.mxu1 %v647_v6 }
  0x19   : > { %608 = vmatprep.mubr.msk.bf16.mxu0 %vm673_vm0, %v672_v1  ;;  %614 = vmatprep.mubr.msk.bf16.mxu1 %vm673_vm0, %v672_v1 }
  0x1f   : > { %609 = vmatmul.mubr.msk.bf16.vlgmr.msra.gmra.mxu0 %vm184_vm1, %v168_v7  ;;  %615 = vmatmul.mubr.msk.bf16.vlgmr.msra.gmra.mxu1 %vm184_vm1, %v168_v7 }
  0xd7   : > { %v222_v10 = vpop.f32.mrf.mxu0  ;;  %v285_v11 = vpop.f32.mrf.mxu1 }
  0xd8   : > { %v223_v12 = vadd.f32 %v552_v8, %v222_v10  ;;  %v286_v13 = vadd.f32 %v558_v9, %v285_v11 }
  0xd9   : > { %v598_v14 = vpop.f32.mrf.mxu0  ;;  %v604_v15 = vpop.f32.mrf.mxu1 }
  0xda   : > { %v229_v16 = vmax.f32 %v223_v12, 0.0  ;;  %v292_v17 = vmax.f32 %v286_v13, 0.0 }
  0xdb   : > { %v225_v18 = vpop.f32.mrf.mxu0  ;;  %v288_v19 = vpop.f32.mrf.mxu1 }
  0xdc   : > { %232 = vst.msk [vmem:[%s751_s12] sm:$0xff] %vm231_vm2, %v229_v16  ;;  %561 = vst.msk [vmem:[%s751_s12 + $0x10] sm:$0xff] %vm231_vm2, %v292_v17  ;;  %v226_v20 = vadd.f32 %v552_v8, %v225_v18  ;;  %v289_v21 = vadd.f32 %v558_v9, %v288_v19 }
  0xdd   : > { %v599_v22 = vpop.f32.mrf.mxu0  ;;  %v605_v23 = vpop.f32.mrf.mxu1 }
  0xde   : > { %v230_v26 = vmax.f32 %v226_v20, 0.0  ;;  %v293_v27 = vmax.f32 %v289_v21, 0.0 }
  0xdf   : > { %v348_v28 = vpop.f32.mrf.mxu0  ;;  %v411_v29 = vpop.f32.mrf.mxu1 }
  0xe0   : > { %233 = vst.msk [vmem:[%s751_s12 + $0x8] sm:$0xff] %vm231_vm2, %v230_v26  ;;  %562 = vst.msk [vmem:[%s751_s12 + $0x18] sm:$0xff] %vm231_vm2, %v293_v27  ;;  %v349_v30 = vadd.f32 %v566_v24, %v348_v28  ;;  %v412_v31 = vadd.f32 %v574_v25, %v411_v29 }
  0xe1   : > { %v610_v32 = vpop.f32.mrf.mxu0  ;;  %v616_v33 = vpop.f32.mrf.mxu1 }
  0xe2   : > { %v355_v34 = vmax.f32 %v349_v30, 0.0  ;;  %v418_v35 = vmax.f32 %v412_v31, 0.0 }
  0xe3   : > { %v351_v36 = vpop.f32.mrf.mxu0  ;;  %v414_v37 = vpop.f32.mrf.mxu1  ;;  %v475_v44 = vld [vmem:[%s751_s12] sm:$0xff] (%p719_p4)  ;;  %v479_v46 = vld [vmem:[%s751_s12 + $0x10] sm:$0xff] (%p719_p4) }
  0xe4   : > { %569 = vst.msk [vmem:[%s751_s12 + $0x20] sm:$0xff] %vm231_vm2, %v355_v34  ;;  %577 = vst.msk [vmem:[%s751_s12 + $0x30] sm:$0xff] %vm231_vm2, %v418_v35  ;;  %v352_v38 = vadd.f32 %v566_v24, %v351_v36  ;;  %v415_v39 = vadd.f32 %v574_v25, %v414_v37  ;;  %429 = sbr.rel (!%p719_p4) target bundleno = 241 (0xf1), region = 36 }
  0xe5   : > { %v611_v40 = vpop.f32.mrf.mxu0  ;;  %v617_v41 = vpop.f32.mrf.mxu1  ;;  %476 = vst [vmem:[%s432_s26] sm:$0xff] (%p719_p4), %v475_v44  ;;  %480 = vst [vmem:[%s432_s26 + $0x20] sm:$0xff] (%p719_p4), %v479_v46 }
  0xe6   : > { %v356_v42 = vmax.f32 %v352_v38, 0.0  ;;  %v419_v43 = vmax.f32 %v415_v39, 0.0 }
  0xe7   : > { %v477_v45 = vld [vmem:[%s751_s12 + $0x8] sm:$0xff] (%p719_p4)  ;;  %v481_v47 = vld [vmem:[%s751_s12 + $0x18] sm:$0xff] (%p719_p4) }
  0xe8   : > { %570 = vst.msk [vmem:[%s751_s12 + $0x28] sm:$0xff] %vm231_vm2, %v356_v42  ;;  %578 = vst.msk [vmem:[%s751_s12 + $0x38] sm:$0xff] %vm231_vm2, %v419_v43 }
  0xe9   : > { %478 = vst [vmem:[%s432_s26 + $0x8] sm:$0xff] %v477_v45  ;;  %482 = vst [vmem:[%s432_s26 + $0x28] sm:$0xff] %v481_v47 }
  0xeb   : > { %v483_v48 = vld [vmem:[%s751_s12 + $0x20] sm:$0xff]  ;;  %v487_v50 = vld [vmem:[%s751_s12 + $0x30] sm:$0xff] }
  0xec   : > { %484 = vst [vmem:[%s432_s26 + $0x40] sm:$0xff] %v483_v48  ;;  %488 = vst [vmem:[%s432_s26 + $0x60] sm:$0xff] %v487_v50 }
  0xef   : > { %v485_v49 = vld [vmem:[%s751_s12 + $0x28] sm:$0xff]  ;;  %v489_v51 = vld [vmem:[%s751_s12 + $0x38] sm:$0xff] }
  0xf0   : > { %486 = vst [vmem:[%s432_s26 + $0x48] sm:$0xff] %v485_v49  ;;  %490 = vst [vmem:[%s432_s26 + $0x68] sm:$0xff] %v489_v51 }
  0xf1 PF: > { %p10_p8 = scmp.ge.s32.totalorder %s709_s16, 4   ;;  %s804_s12 = smov %s666_s13 }
  0xf2   : > { %s805_s13 = smov %s717_s19  ;;  %s806_s14 = smov %s709_s16 }
  0xf3   :  { %12 = sbr.rel (!%p10_p8) target bundleno = 2 (0x2), region = 109 }

// kernel: bottle2neck_forward.7
= control target key start
LH: loop header
LB: loop body
LE: loop exit
PB: predicated region body
PF: predicated region fallthrough
CT: control target
= control target key end

     0   :  { %s503_s18 = smov 0   ;;  %s548_s0 = inlined_call_operand.vmem [shape: f32[4,2,16,8], index: 0, kind: input, shape index: {}]   ;;  %s549_s1 = inlined_call_operand.vmem [shape: f32[1,8], index: 1, kind: input, shape index: {}]   ;;  %s550_s2 = inlined_call_operand.vmem [shape: f32[1,8], index: 2, kind: input, shape index: {}]   ;;  %s551_s3 = inlined_call_operand.vmem [shape: bf16[24,8], index: 3, kind: input, shape index: {}]   ;;  %s552_s4 = inlined_call_operand.vmem [shape: f32[1,8], index: 4, kind: input, shape index: {}]   ;;  %s553_s5 = inlined_call_operand.vmem [shape: f32[2,16,8], index: 5, kind: output, shape index: {}]  }
   0x1 LB: > { %s407_s19 = sadd.s32 4294967295, %s467_s18   ;;  %p411_p0 = scmp.ge.s32.totalorder %s467_s18, 1  ;;  %s467_s18 = sphi %s503_s18, %s15_s18  }
   0x2   : > { %p187_p1 = scmp.lt.s32.totalorder %s467_s18, 3 }
   0x4   : > { %p188_p2 = pnand %p411_p0, %p187_p1 }
   0x5   : > { %p215_p3 = scmp.lt.s32.totalorder (!%p188_p2), %s407_s19, 1  ;;  %s471_s7 = smov (!%p188_p2), 8  }
   0x6   : > { %191 = sbr.rel (%p188_p2) target bundleno = 355 (0x163), region = 40  ;;  %s472_s8 = smov (!%p188_p2), 16  }
   0xb   : > { %vm246_vm0 = vcmask 58368   ;;  %s555_s19 = smov (!%p215_p3, %s407_s19), 1  ;;  %v469_v0 = vmov 0.0   ;;  %v416_v1 = vld [vmem:[%s549_s1] ss:$0 sm:$0xff]  ;;  %vm249_vm1 = vcmask 64512  }
   0xc   : > { %247 = vst.msk [vmem:[#allocation2] sm:$0x3] %vm246_vm0, %v469_v0  ;;  %248 = vst.msk [vmem:[#allocation2 + $0x12] sm:$0x3] %vm246_vm0, %v469_v0  ;;  %429 = vmatprep.subr.bf16.mxu0 %v469_v0  ;;  %s424_s20 = sshll.u32 %s555_s19, 4  ;;  %vm303_vm2 = vcmask 1043456  }
   0xd   : > { %s219_s25 = scalar_lea.vmem %s548_s0, %s424_s20  ;;  %v417_v4 = vld [vmem:[%s550_s2] ss:$0 sm:$0xff]  ;;  %v459_v7 = vld [vmem:[%s551_s3 + $0x8] ss:$0 sps:$4 sm:$0xff]   ;;  %vm470_vm3 = vmmov 0   ;;  %vm276_vm4 = vcmask 130048   ;;  %s224_s13 = scalar_lea.vmem %s553_s5, %s424_s20 }
   0xe   : > { %v226_v2 = vld [vmem:[%s219_s25] sm:$0xff]  ;;  %v227_v3 = vld [vmem:[%s219_s25 + $0x8] sm:$0xff]  ;;  %v305_v10 = vsel %vm303_vm2, %v459_v7, 0  ;;  %433 = vmatprep.mubr.msk.bf16.mxu0 %vm470_vm3, %v469_v0  ;;  %vm299_vm5 = vcmask 195584  }
   0xf   : > { %v235_v5 = vmul.f32 %v416_v1, %v226_v2  ;;  %v236_v6 = vmul.f32 %v416_v1, %v227_v3  ;;  %430 = vmatpush3.bf16.msra.mxu0 %v305_v10  ;;  %v460_v11 = vld [vmem:[%s551_s3] sm:$0xff]  }
  0x10   : > { %431 = vmatprep.subr.bf16.mxu0 %v469_v0  ;;  %v418_v31 = vld [vmem:[%s552_s4] ss:$0 sm:$0xff] }
  0x11   : > { %v244_v8 = vadd.f32 %v417_v4, %v235_v5  ;;  %v245_v9 = vadd.f32 %v417_v4, %v236_v6 }
  0x13   : > { %250 = vst.msk [vmem:[#allocation2 + $0x2] sm:$0xff] %vm249_vm1, %v244_v8  ;;  %251 = vst.msk [vmem:[#allocation2 + $0xa] sm:$0xff] %vm249_vm1, %v245_v9  ;;  %432 = vmatpush3.bf16.msra.mxu0 %v460_v11 }
  0x1a   : > { %v254_v12 = vld [vmem:[#allocation2 + $0x2] sm:$0xff]  ;;  %v255_v13 = vld [vmem:[#allocation2 + $0xa] sm:$0xff] }
  0x1b   : > { %v256_v14 = vld [vmem:[#allocation2 + $0x4] sm:$0xff]  ;;  %v449_v15 = vpack.i.bf16 %v255_v13, %v254_v12  ;;  %v257_v16 = vld [vmem:[#allocation2 + $0xc] sm:$0xff] }
  0x1c   : > { %v454_v17 = vpack.i.bf16 %v257_v16, %v256_v14  ;;  %v252_v21 = vld [vmem:[#allocation2] sm:$0xff]  ;;  %v253_v22 = vld [vmem:[#allocation2 + $0x8] sm:$0xff] }
  0x1d   : > { %450 = vrot.lane.b32.xlu0 %v449_v15, %s471_s7 }
  0x21   : > { %455 = vrot.lane.b32.xlu0 %v454_v17, %s472_s8 }
  0x8f   : > { %v451_v18 = vpop.permute.xlu0 %450 }
  0x90   : > { %v453_v19 = vunpack.i.h.bf16 %v451_v18  ;;  %v452_v20 = vunpack.i.l.bf16 %v451_v18 }
  0x92   : > { %v274_v26 = vsel %vm249_vm1, %v252_v21, %v452_v20  ;;  %v275_v27 = vsel %vm249_vm1, %v253_v22, %v453_v19 }
  0x93   : > { %v456_v23 = vpop.permute.xlu0 %455 }
  0x94   : > { %v458_v24 = vunpack.i.h.bf16 %v456_v23  ;;  %v457_v25 = vunpack.i.l.bf16 %v456_v23 }
  0x96   : > { %v277_v28 = vsel %vm276_vm4, %v274_v26, %v457_v25  ;;  %v278_v29 = vsel %vm276_vm4, %v275_v27, %v458_v24 }
  0x97   : > { %v279_v30 = vpack.c.bf16 %v278_v29, %v277_v28 }
  0x99   : > { %434 = vmatmul.mubr.msk.bf16.vlgmr.msra.gmra.mxu0 %vm299_vm5, %v279_v30 }
 0x159   : > { %v341_v32 = vpop.f32.mrf.mxu0 }
 0x15a   : > { %v342_v33 = vadd.f32 %v418_v31, %v341_v32 }
 0x15b   : > { %v435_v34 = vpop.f32.mrf.mxu0 }
 0x15c   : > { %v348_v35 = vmax.f32 %v342_v33, 0.0 }
 0x15d   : > { %v344_v36 = vpop.f32.mrf.mxu0 }
 0x15e   : > { %350 = vst.msk [vmem:[%s224_s13] sm:$0xff] %vm249_vm1, %v348_v35  ;;  %v345_v37 = vadd.f32 %v418_v31, %v344_v36 }
 0x15f   : > { %v436_v38 = vpop.f32.mrf.mxu0 }
 0x160   : > { %v349_v39 = vmax.f32 %v345_v37, 0.0 }
 0x162   : > { %351 = vst.msk [vmem:[%s224_s13 + $0x8] sm:$0xff] %vm249_vm1, %v349_v39 }
 0x163 PF: > { %s15_s18 = sadd.s32 1, %s467_s18  }
 0x164   : > { %p12_p4 = scmp.ge.s32.totalorder %s15_s18, 4  }
 0x166   :  { %14 = sbr.rel (!%p12_p4) target bundleno = 1 (0x1), region = 70 }

// kernel: bottle2neck_forward.8
= control target key start
LH: loop header
LB: loop body
LE: loop exit
PB: predicated region body
PF: predicated region fallthrough
CT: control target
= control target key end

     0   :  { %s669_s27 = smov 0   ;;  %s721_s0 = inlined_call_operand.vmem [shape: f32[4,2,16,8], index: 0, kind: input, shape index: {}]   ;;  %s722_s1 = inlined_call_operand.vmem [shape: f32[1,8], index: 1, kind: input, shape index: {}]   ;;  %s723_s2 = inlined_call_operand.vmem [shape: f32[1,8], index: 2, kind: input, shape index: {}]   ;;  %s724_s3 = inlined_call_operand.vmem [shape: f32[2,16,8], index: 3, kind: input, shape index: {}]   ;;  %s725_s4 = inlined_call_operand.vmem [shape: f32[1,8], index: 4, kind: input, shape index: {}]   ;;  %s726_s5 = inlined_call_operand.vmem [shape: f32[1,8], index: 5, kind: input, shape index: {}]   ;;  %s727_s6 = inlined_call_operand.vmem [shape: bf16[24,8], index: 6, kind: input, shape index: {}]   ;;  %s728_s7 = inlined_call_operand.vmem [shape: f32[1,8], index: 7, kind: input, shape index: {}]   ;;  %s729_s8 = inlined_call_operand.vmem [shape: f32[2,16,8], index: 8, kind: output, shape index: {}]  }
   0x1 LB: > { %s551_s28 = sadd.s32 4294967295, %s618_s27   ;;  %p555_p0 = scmp.ge.s32.totalorder %s618_s27, 1  ;;  %s618_s27 = sphi %s669_s27, %s18_s27  }
   0x2   : > { %p273_p1 = scmp.lt.s32.totalorder %s618_s27, 3 }
   0x4   : > { %p274_p2 = pnand %p555_p0, %p273_p1 }
   0x5   : > { %p313_p3 = scmp.lt.s32.totalorder (!%p274_p2), %s551_s28, 1  ;;  %s622_s26 = smov (!%p274_p2), 8  }
   0x6   : > { %277 = sbr.rel (%p274_p2) target bundleno = 360 (0x168), region = 52 }
   0xb   : > { %vm372_vm0 = vcmask 58368   ;;  %s731_s28 = smov (!%p313_p3, %s551_s28), 1  ;;  %v620_v0 = vmov 0.0   ;;  %v564_v1 = vld [vmem:[%s722_s1] ss:$0 sm:$0xff]  ;;  %vm375_vm1 = vcmask 64512  }
   0xc   : > { %373 = vst.msk [vmem:[#allocation2] sm:$0x3] %vm372_vm0, %v620_v0  ;;  %374 = vst.msk [vmem:[#allocation2 + $0x12] sm:$0x3] %vm372_vm0, %v620_v0  ;;  %580 = vmatprep.subr.bf16.mxu0 %v620_v0  ;;  %s677_s29 = sshll.u32 %s731_s28, 4  ;;  %vm429_vm2 = vcmask 1043456  }
   0xd   : > { %v566_v2 = vld [vmem:[%s725_s4] ss:$0 sm:$0xff]  ;;  %s515_s14 = scalar_lea.vmem %s721_s0, %s677_s29  ;;  %s323_s17 = scalar_lea.vmem %s724_s3, %s677_s29  ;;  %v610_v17 = vld [vmem:[%s727_s6 + $0x8] ss:$0 sps:$4 sm:$0xff]   ;;  %vm621_vm3 = vmmov 0   ;;  %vm402_vm4 = vcmask 130048  }
   0xe   : > { %v565_v3 = vld [vmem:[%s723_s2] ss:$0 sm:$0xff]  ;;  %v563_v6 = vld [vmem:[%s515_s14 + $0x28] sm:$0xff]  ;;  %v431_v20 = vsel %vm429_vm2, %v610_v17, 0  ;;  %584 = vmatprep.mubr.msk.bf16.mxu0 %vm621_vm3, %v620_v0  ;;  %s623_s28 = smov 16   ;;  %vm425_vm5 = vcmask 195584   ;;  %s328_s12 = scalar_lea.vmem %s729_s8, %s677_s29 }
   0xf   : > { %v567_v4 = vld [vmem:[%s726_s5] ss:$0 sm:$0xff]  ;;  %v340_v9 = vmul.f32 %v564_v1, %v563_v6  ;;  %v351_v10 = vld [vmem:[%s323_s17 + $0x8] sm:$0xff]  ;;  %581 = vmatpush3.bf16.msra.mxu0 %v431_v20 }
  0x10   : > { %v562_v5 = vld [vmem:[%s515_s14 + $0x20] sm:$0xff]  ;;  %v360_v12 = vmul.f32 %v566_v2, %v351_v10  ;;  %582 = vmatprep.subr.bf16.mxu0 %v620_v0 }
  0x11   : > { %v350_v7 = vld [vmem:[%s323_s17] sm:$0xff]  ;;  %v339_v8 = vmul.f32 %v564_v1, %v562_v5  ;;  %v349_v14 = vadd.f32 %v565_v3, %v340_v9 }
  0x12   : > { %v359_v11 = vmul.f32 %v566_v2, %v350_v7  ;;  %v369_v16 = vadd.f32 %v567_v4, %v360_v12  ;;  %v611_v21 = vld [vmem:[%s727_s6] sm:$0xff]  }
  0x13   : > { %v348_v13 = vadd.f32 %v565_v3, %v339_v8  ;;  %583 = vmatpush3.bf16.msra.mxu0 %v611_v21  ;;  %v568_v41 = vld [vmem:[%s728_s7] ss:$0 sm:$0xff] }
  0x14   : > { %v368_v15 = vadd.f32 %v567_v4, %v359_v11  ;;  %v371_v19 = vadd.f32 %v369_v16, %v349_v14 }
  0x16   : > { %v370_v18 = vadd.f32 %v368_v15, %v348_v13  ;;  %377 = vst.msk [vmem:[#allocation2 + $0xa] sm:$0xff] %vm375_vm1, %v371_v19 }
  0x18   : > { %376 = vst.msk [vmem:[#allocation2 + $0x2] sm:$0xff] %vm375_vm1, %v370_v18 }
  0x1d   : > { %v381_v23 = vld [vmem:[#allocation2 + $0xa] sm:$0xff] }
  0x1e   : > { %v383_v25 = vld [vmem:[#allocation2 + $0xc] sm:$0xff] }
  0x1f   : > { %v380_v22 = vld [vmem:[#allocation2 + $0x2] sm:$0xff] }
  0x20   : > { %v382_v24 = vld [vmem:[#allocation2 + $0x4] sm:$0xff]  ;;  %v600_v26 = vpack.i.bf16 %v381_v23, %v380_v22 }
  0x21   : > { %v605_v27 = vpack.i.bf16 %v383_v25, %v382_v24  ;;  %v378_v31 = vld [vmem:[#allocation2] sm:$0xff]  ;;  %v379_v32 = vld [vmem:[#allocation2 + $0x8] sm:$0xff] }
  0x22   : > { %601 = vrot.lane.b32.xlu0 %v600_v26, %s622_s26 }
  0x26   : > { %606 = vrot.lane.b32.xlu0 %v605_v27, %s623_s28 }
  0x94   : > { %v602_v28 = vpop.permute.xlu0 %601 }
  0x95   : > { %v604_v29 = vunpack.i.h.bf16 %v602_v28  ;;  %v603_v30 = vunpack.i.l.bf16 %v602_v28 }
  0x97   : > { %v400_v36 = vsel %vm375_vm1, %v378_v31, %v603_v30  ;;  %v401_v37 = vsel %vm375_vm1, %v379_v32, %v604_v29 }
  0x98   : > { %v607_v33 = vpop.permute.xlu0 %606 }
  0x99   : > { %v609_v34 = vunpack.i.h.bf16 %v607_v33  ;;  %v608_v35 = vunpack.i.l.bf16 %v607_v33 }
  0x9b   : > { %v403_v38 = vsel %vm402_vm4, %v400_v36, %v608_v35  ;;  %v404_v39 = vsel %vm402_vm4, %v401_v37, %v609_v34 }
  0x9c   : > { %v405_v40 = vpack.c.bf16 %v404_v39, %v403_v38 }
  0x9e   : > { %585 = vmatmul.mubr.msk.bf16.vlgmr.msra.gmra.mxu0 %vm425_vm5, %v405_v40 }
 0x15e   : > { %v467_v42 = vpop.f32.mrf.mxu0 }
 0x15f   : > { %v468_v43 = vadd.f32 %v568_v41, %v467_v42 }
 0x160   : > { %v586_v44 = vpop.f32.mrf.mxu0 }
 0x161   : > { %v474_v45 = vmax.f32 %v468_v43, 0.0 }
 0x162   : > { %v470_v46 = vpop.f32.mrf.mxu0 }
 0x163   : > { %476 = vst.msk [vmem:[%s328_s12] sm:$0xff] %vm375_vm1, %v474_v45  ;;  %v471_v47 = vadd.f32 %v568_v41, %v470_v46 }
 0x164   : > { %v587_v48 = vpop.f32.mrf.mxu0 }
 0x165   : > { %v475_v49 = vmax.f32 %v471_v47, 0.0 }
 0x167   : > { %477 = vst.msk [vmem:[%s328_s12 + $0x8] sm:$0xff] %vm375_vm1, %v475_v49 }
 0x168 PF: > { %s18_s27 = sadd.s32 1, %s618_s27  }
 0x169   : > { %p15_p4 = scmp.ge.s32.totalorder %s18_s27, 4  }
 0x16b   :  { %17 = sbr.rel (!%p15_p4) target bundleno = 1 (0x1), region = 85 }

// kernel: bottle2neck_forward.9
= control target key start
LH: loop header
LB: loop body
LE: loop exit
PB: predicated region body
PF: predicated region fallthrough
CT: control target
= control target key end

     0   :  { %s669_s27 = smov 0   ;;  %s721_s0 = inlined_call_operand.vmem [shape: f32[4,2,16,8], index: 0, kind: input, shape index: {}]   ;;  %s722_s1 = inlined_call_operand.vmem [shape: f32[1,8], index: 1, kind: input, shape index: {}]   ;;  %s723_s2 = inlined_call_operand.vmem [shape: f32[1,8], index: 2, kind: input, shape index: {}]   ;;  %s724_s3 = inlined_call_operand.vmem [shape: f32[2,16,8], index: 3, kind: input, shape index: {}]   ;;  %s725_s4 = inlined_call_operand.vmem [shape: f32[1,8], index: 4, kind: input, shape index: {}]   ;;  %s726_s5 = inlined_call_operand.vmem [shape: f32[1,8], index: 5, kind: input, shape index: {}]   ;;  %s727_s6 = inlined_call_operand.vmem [shape: bf16[24,8], index: 6, kind: input, shape index: {}]   ;;  %s728_s7 = inlined_call_operand.vmem [shape: f32[1,8], index: 7, kind: input, shape index: {}]   ;;  %s729_s8 = inlined_call_operand.vmem [shape: f32[2,16,8], index: 8, kind: output, shape index: {}]  }
   0x1 LB: > { %s551_s28 = sadd.s32 4294967295, %s618_s27   ;;  %p555_p0 = scmp.ge.s32.totalorder %s618_s27, 1  ;;  %s618_s27 = sphi %s669_s27, %s18_s27  }
   0x2   : > { %p273_p1 = scmp.lt.s32.totalorder %s618_s27, 3 }
   0x4   : > { %p274_p2 = pnand %p555_p0, %p273_p1 }
   0x5   : > { %p313_p3 = scmp.lt.s32.totalorder (!%p274_p2), %s551_s28, 1  ;;  %s622_s26 = smov (!%p274_p2), 8  }
   0x6   : > { %277 = sbr.rel (%p274_p2) target bundleno = 360 (0x168), region = 52 }
   0xb   : > { %vm372_vm0 = vcmask 58368   ;;  %s731_s28 = smov (!%p313_p3, %s551_s28), 1  ;;  %v620_v0 = vmov 0.0   ;;  %v564_v1 = vld [vmem:[%s722_s1] ss:$0 sm:$0xff]  ;;  %vm375_vm1 = vcmask 64512  }
   0xc   : > { %373 = vst.msk [vmem:[#allocation2] sm:$0x3] %vm372_vm0, %v620_v0  ;;  %374 = vst.msk [vmem:[#allocation2 + $0x12] sm:$0x3] %vm372_vm0, %v620_v0  ;;  %580 = vmatprep.subr.bf16.mxu0 %v620_v0  ;;  %s677_s29 = sshll.u32 %s731_s28, 4  ;;  %vm429_vm2 = vcmask 1043456  }
   0xd   : > { %v566_v2 = vld [vmem:[%s725_s4] ss:$0 sm:$0xff]  ;;  %s515_s14 = scalar_lea.vmem %s721_s0, %s677_s29  ;;  %s323_s17 = scalar_lea.vmem %s724_s3, %s677_s29  ;;  %v610_v17 = vld [vmem:[%s727_s6 + $0x8] ss:$0 sps:$4 sm:$0xff]   ;;  %vm621_vm3 = vmmov 0   ;;  %vm402_vm4 = vcmask 130048  }
   0xe   : > { %v565_v3 = vld [vmem:[%s723_s2] ss:$0 sm:$0xff]  ;;  %v563_v6 = vld [vmem:[%s515_s14 + $0x48] sm:$0xff]  ;;  %v431_v20 = vsel %vm429_vm2, %v610_v17, 0  ;;  %584 = vmatprep.mubr.msk.bf16.mxu0 %vm621_vm3, %v620_v0  ;;  %s623_s28 = smov 16   ;;  %vm425_vm5 = vcmask 195584   ;;  %s328_s12 = scalar_lea.vmem %s729_s8, %s677_s29 }
   0xf   : > { %v567_v4 = vld [vmem:[%s726_s5] ss:$0 sm:$0xff]  ;;  %v340_v9 = vmul.f32 %v564_v1, %v563_v6  ;;  %v351_v10 = vld [vmem:[%s323_s17 + $0x8] sm:$0xff]  ;;  %581 = vmatpush3.bf16.msra.mxu0 %v431_v20 }
  0x10   : > { %v562_v5 = vld [vmem:[%s515_s14 + $0x40] sm:$0xff]  ;;  %v360_v12 = vmul.f32 %v566_v2, %v351_v10  ;;  %582 = vmatprep.subr.bf16.mxu0 %v620_v0 }
  0x11   : > { %v350_v7 = vld [vmem:[%s323_s17] sm:$0xff]  ;;  %v339_v8 = vmul.f32 %v564_v1, %v562_v5  ;;  %v349_v14 = vadd.f32 %v565_v3, %v340_v9 }
  0x12   : > { %v359_v11 = vmul.f32 %v566_v2, %v350_v7  ;;  %v369_v16 = vadd.f32 %v567_v4, %v360_v12  ;;  %v611_v21 = vld [vmem:[%s727_s6] sm:$0xff]  }
  0x13   : > { %v348_v13 = vadd.f32 %v565_v3, %v339_v8  ;;  %583 = vmatpush3.bf16.msra.mxu0 %v611_v21  ;;  %v568_v41 = vld [vmem:[%s728_s7] ss:$0 sm:$0xff] }
  0x14   : > { %v368_v15 = vadd.f32 %v567_v4, %v359_v11  ;;  %v371_v19 = vadd.f32 %v369_v16, %v349_v14 }
  0x16   : > { %v370_v18 = vadd.f32 %v368_v15, %v348_v13  ;;  %377 = vst.msk [vmem:[#allocation2 + $0xa] sm:$0xff] %vm375_vm1, %v371_v19 }
  0x18   : > { %376 = vst.msk [vmem:[#allocation2 + $0x2] sm:$0xff] %vm375_vm1, %v370_v18 }
  0x1d   : > { %v381_v23 = vld [vmem:[#allocation2 + $0xa] sm:$0xff] }
  0x1e   : > { %v383_v25 = vld [vmem:[#allocation2 + $0xc] sm:$0xff] }
  0x1f   : > { %v380_v22 = vld [vmem:[#allocation2 + $0x2] sm:$0xff] }
  0x20   : > { %v382_v24 = vld [vmem:[#allocation2 + $0x4] sm:$0xff]  ;;  %v600_v26 = vpack.i.bf16 %v381_v23, %v380_v22 }
  0x21   : > { %v605_v27 = vpack.i.bf16 %v383_v25, %v382_v24  ;;  %v378_v31 = vld [vmem:[#allocation2] sm:$0xff]  ;;  %v379_v32 = vld [vmem:[#allocation2 + $0x8] sm:$0xff] }
  0x22   : > { %601 = vrot.lane.b32.xlu0 %v600_v26, %s622_s26 }
  0x26   : > { %606 = vrot.lane.b32.xlu0 %v605_v27, %s623_s28 }
  0x94   : > { %v602_v28 = vpop.permute.xlu0 %601 }
  0x95   : > { %v604_v29 = vunpack.i.h.bf16 %v602_v28  ;;  %v603_v30 = vunpack.i.l.bf16 %v602_v28 }
  0x97   : > { %v400_v36 = vsel %vm375_vm1, %v378_v31, %v603_v30  ;;  %v401_v37 = vsel %vm375_vm1, %v379_v32, %v604_v29 }
  0x98   : > { %v607_v33 = vpop.permute.xlu0 %606 }
  0x99   : > { %v609_v34 = vunpack.i.h.bf16 %v607_v33  ;;  %v608_v35 = vunpack.i.l.bf16 %v607_v33 }
  0x9b   : > { %v403_v38 = vsel %vm402_vm4, %v400_v36, %v608_v35  ;;  %v404_v39 = vsel %vm402_vm4, %v401_v37, %v609_v34 }
  0x9c   : > { %v405_v40 = vpack.c.bf16 %v404_v39, %v403_v38 }
  0x9e   : > { %585 = vmatmul.mubr.msk.bf16.vlgmr.msra.gmra.mxu0 %vm425_vm5, %v405_v40 }
 0x15e   : > { %v467_v42 = vpop.f32.mrf.mxu0 }
 0x15f   : > { %v468_v43 = vadd.f32 %v568_v41, %v467_v42 }
 0x160   : > { %v586_v44 = vpop.f32.mrf.mxu0 }
 0x161   : > { %v474_v45 = vmax.f32 %v468_v43, 0.0 }
 0x162   : > { %v470_v46 = vpop.f32.mrf.mxu0 }
 0x163   : > { %476 = vst.msk [vmem:[%s328_s12] sm:$0xff] %vm375_vm1, %v474_v45  ;;  %v471_v47 = vadd.f32 %v568_v41, %v470_v46 }
 0x164   : > { %v587_v48 = vpop.f32.mrf.mxu0 }
 0x165   : > { %v475_v49 = vmax.f32 %v471_v47, 0.0 }
 0x167   : > { %477 = vst.msk [vmem:[%s328_s12 + $0x8] sm:$0xff] %vm375_vm1, %v475_v49 }
 0x168 PF: > { %s18_s27 = sadd.s32 1, %s618_s27  }
 0x169   : > { %p15_p4 = scmp.ge.s32.totalorder %s18_s27, 4  }
 0x16b   :  { %17 = sbr.rel (!%p15_p4) target bundleno = 1 (0x1), region = 85 }

// kernel: bottle2neck_forward.10
= control target key start
LH: loop header
LB: loop body
LE: loop exit
PB: predicated region body
PF: predicated region fallthrough
CT: control target
= control target key end

     0   :  { %s1095_s29 = smov 0   ;;  %s1187_s0 = inlined_call_operand.vmem [shape: f32[4,2,16,8], index: 0, kind: input, shape index: {}]   ;;  %s1188_s1 = inlined_call_operand.vmem [shape: f32[1,8], index: 1, kind: input, shape index: {}]   ;;  %s1189_s2 = inlined_call_operand.vmem [shape: f32[1,8], index: 2, kind: input, shape index: {}]   ;;  %s1190_s3 = inlined_call_operand.vmem [shape: f32[2,16,8], index: 3, kind: input, shape index: {}]   ;;  %s1191_s4 = inlined_call_operand.vmem [shape: f32[2,16,8], index: 4, kind: input, shape index: {}]   ;;  %s1192_s5 = inlined_call_operand.vmem [shape: f32[2,16,8], index: 5, kind: input, shape index: {}]   ;;  %s1193_s6 = inlined_call_operand.vmem [shape: f32[1,8], index: 6, kind: input, shape index: {}]   ;;  %s1194_s7 = inlined_call_operand.vmem [shape: f32[1,8], index: 7, kind: input, shape index: {}]   ;;  %s1195_s8 = inlined_call_operand.vmem [shape: f32[1,8], index: 8, kind: input, shape index: {}]   ;;  %s1196_s9 = inlined_call_operand.vmem [shape: f32[1,8], index: 9, kind: input, shape index: {}]   ;;  %s1197_s10 = inlined_call_operand.vmem [shape: f32[1,8], index: 10, kind: input, shape index: {}]   ;;  %s1198_s11 = inlined_call_operand.vmem [shape: f32[1,8], index: 11, kind: input, shape index: {}]   ;;  %s1199_s12 = inlined_call_operand.vmem [shape: bf16[4,8,32], index: 12, kind: input, shape index: {}]   ;;  %s1200_s13 = inlined_call_operand.vmem [shape: f32[1,32], index: 13, kind: input, shape index: {}]   ;;  %s1201_s14 = inlined_call_operand.vmem [shape: f32[2,16,32], index: 14, kind: output, shape index: {}]  }
   0x1 LB: > { %s928_s30 = sadd.s32 4294967295, %s1016_s29   ;;  %p932_p0 = scmp.ge.s32.totalorder %s1016_s29, 1  ;;  %s1016_s29 = sphi %s1095_s29, %s24_s29  }
   0x2   : > { %p443_p1 = scmp.lt.s32.totalorder %s1016_s29, 3 }
   0x4   : > { %p444_p2 = pnand %p932_p0, %p443_p1 }
   0x5   : > { %p505_p3 = scmp.lt.s32.totalorder (!%p444_p2), %s928_s30, 1 }
   0x6   : > { %447 = sbr.rel (%p444_p2) target bundleno = 239 (0xef), region = 76 }
   0xb   : > { %v576_v0 = vld [vmem:[%s1199_s12] sm:$0xf]  ;;  %vm581_vm0 = vcmask 1043456   ;;  %v947_v1 = vld [vmem:[%s1199_s12 + $0xc] sm:$0xf]  ;;  %v1018_v2 = vmov 0.0  }
   0xc   : > { %976 = vmatprep.subr.bf16.mxu0 %v1018_v2  ;;  %v583_v3 = vsel %vm581_vm0, %v576_v0, 0  ;;  %982 = vmatprep.subr.bf16.mxu1 %v1018_v2  ;;  %v630_v4 = vsel %vm581_vm0, %v947_v1, 0  ;;  %vm1019_vm1 = vmmov 0   ;;  %s1203_s30 = smov (!%p505_p3, %s928_s30), 1  ;;  %v948_v5 = vld [vmem:[%s1193_s6] ss:$0 sm:$0xff] }
   0xd   : > { %977 = vmatpush3.bf16.msra.mxu0 %v583_v3  ;;  %983 = vmatpush3.bf16.msra.mxu1 %v630_v4  ;;  %s1122_s21 = sshll.u32 %s1203_s30, 4  ;;  %v949_v6 = vld [vmem:[%s1196_s9] ss:$0 sm:$0xff]  ;;  %v954_v21 = vld [vmem:[%s1199_s12 + $0x4] sm:$0xf]  ;;  %vm577_vm2 = vcmask 64512  }
   0xe   : > { %978 = vmatprep.mubr.msk.bf16.mxu0 %vm1019_vm1, %v1018_v2  ;;  %984 = vmatprep.mubr.msk.bf16.mxu1 %vm1019_vm1, %v1018_v2  ;;  %v945_v7 = vld [vmem:[%s1188_s1] ss:$0 sm:$0xff]  ;;  %s515_s28 = scalar_lea.vmem %s1190_s3, %s1122_s21  ;;  %s876_s30 = scalar_lea.vmem %s1187_s0, %s1122_s21  ;;  %v958_v28 = vld [vmem:[%s1199_s12 + $0x8] sm:$0xf]  ;;  %v700_v35 = vsel %vm581_vm0, %v954_v21, 0  ;;  %vm828_vm3 = vcmask 261120  }
   0xf   : > { %988 = vmatprep.subr.bf16.mxu0 %v1018_v2  ;;  %994 = vmatprep.subr.bf16.mxu1 %v1018_v2  ;;  %v946_v8 = vld [vmem:[%s1189_s2] ss:$0 sm:$0xff]  ;;  %v556_v12 = vld [vmem:[%s515_s28 + $0x8] sm:$0xff]  ;;  %s520_s26 = scalar_lea.vmem %s1191_s4, %s1122_s21  ;;  %s525_s16 = scalar_lea.vmem %s1192_s5, %s1122_s21  ;;  %v772_v38 = vsel %vm581_vm0, %v958_v28, 0 }
  0x10   : > { %v952_v9 = vld [vmem:[%s1194_s7] ss:$0 sm:$0xff]  ;;  %v565_v15 = vmul.f32 %v948_v5, %v556_v12  ;;  %v944_v16 = vld [vmem:[%s876_s30 + $0x68] sm:$0xff]  ;;  %s530_s15 = scalar_lea.vmem %s1201_s14, %s1122_s21 }
  0x11   : > { %v956_v10 = vld [vmem:[%s1195_s8] ss:$0 sm:$0xff]  ;;  %v674_v19 = vld [vmem:[%s520_s26 + $0x8] sm:$0xff]  ;;  %v542_v20 = vmul.f32 %v945_v7, %v944_v16 }
  0x12   : > { %v555_v11 = vld [vmem:[%s515_s28] sm:$0xff]  ;;  %v746_v24 = vld [vmem:[%s525_s16 + $0x8] sm:$0xff]  ;;  %v574_v26 = vadd.f32 %v949_v6, %v565_v15  ;;  %v683_v29 = vmul.f32 %v952_v9, %v674_v19 }
  0x13   : > { %v943_v13 = vld [vmem:[%s876_s30 + $0x60] sm:$0xff]  ;;  %v564_v14 = vmul.f32 %v948_v5, %v555_v11  ;;  %v551_v30 = vadd.f32 %v946_v8, %v542_v20  ;;  %v755_v33 = vmul.f32 %v956_v10, %v746_v24 }
  0x14   : > { %v541_v17 = vmul.f32 %v945_v7, %v943_v13  ;;  %v673_v18 = vld [vmem:[%s520_s26] sm:$0xff] }
  0x15   : > { %v682_v22 = vmul.f32 %v952_v9, %v673_v18  ;;  %v745_v23 = vld [vmem:[%s525_s16] sm:$0xff]  ;;  %v573_v25 = vadd.f32 %v949_v6, %v564_v14 }
  0x16   : > { %v550_v27 = vadd.f32 %v946_v8, %v541_v17  ;;  %v953_v31 = vld [vmem:[%s1197_s10] ss:$0 sm:$0xff]  ;;  %v754_v32 = vmul.f32 %v956_v10, %v745_v23 }
  0x17   : > { %v575_v34 = vpack.c.bf16 %v574_v26, %v573_v25  ;;  %v957_v36 = vld [vmem:[%s1198_s11] ss:$0 sm:$0xff]  ;;  %v691_v39 = vadd.f32 %v953_v31, %v682_v22  ;;  %v692_v40 = vadd.f32 %v953_v31, %v683_v29 }
  0x18   : > { %v552_v37 = vpack.c.bf16 %v551_v30, %v550_v27  ;;  %v763_v41 = vadd.f32 %v957_v36, %v754_v32  ;;  %v764_v42 = vadd.f32 %v957_v36, %v755_v33  ;;  %v960_v57 = vld [vmem:[%s1200_s13] ss:$0 sm:$0xff] }
  0x19   : > { %979 = vmatmul.mubr.msk.bf16.vlgmr.msra.gmra.mxu0 %vm577_vm2, %v575_v34  ;;  %v693_v43 = vpack.c.bf16 %v692_v40, %v691_v39 }
  0x1a   : > { %985 = vmatmul.mubr.msk.bf16.vlgmr.msra.gmra.mxu1 %vm577_vm2, %v552_v37  ;;  %989 = vmatpush3.bf16.msra.mxu0 %v700_v35  ;;  %v765_v44 = vpack.c.bf16 %v764_v42, %v763_v41 }
  0x1b   : > { %995 = vmatpush3.bf16.msra.mxu1 %v772_v38  ;;  %990 = vmatprep.mubr.msk.bf16.mxu0 %vm1019_vm1, %v1018_v2 }
  0x1c   : > { %996 = vmatprep.mubr.msk.bf16.mxu1 %vm1019_vm1, %v1018_v2 }
  0x21   : > { %991 = vmatmul.mubr.msk.bf16.vlgmr.msra.gmra.mxu0 %vm577_vm2, %v693_v43 }
  0x22   : > { %997 = vmatmul.mubr.msk.bf16.vlgmr.msra.gmra.mxu1 %vm577_vm2, %v765_v44 }
  0xd9   : > { %v619_v45 = vpop.f32.mrf.mxu0 }
  0xda   : > { %v666_v46 = vpop.f32.mrf.mxu1 }
  0xdb   : > { %v980_v47 = vpop.f32.mrf.mxu0  ;;  %v667_v52 = vadd.f32 %v666_v46, %v619_v45 }
  0xdc   : > { %v986_v48 = vpop.f32.mrf.mxu1 }
  0xdd   : > { %v622_v49 = vpop.f32.mrf.mxu0 }
  0xde   : > { %v669_v50 = vpop.f32.mrf.mxu1 }
  0xdf   : > { %v981_v51 = vpop.f32.mrf.mxu0  ;;  %v670_v59 = vadd.f32 %v669_v50, %v622_v49 }
  0xe0   : > { %v987_v53 = vpop.f32.mrf.mxu1 }
  0xe1   : > { %v736_v54 = vpop.f32.mrf.mxu0 }
  0xe2   : > { %v743_v55 = vadd.f32 %v736_v54, %v667_v52  ;;  %v808_v56 = vpop.f32.mrf.mxu1 }
  0xe3   : > { %v992_v58 = vpop.f32.mrf.mxu0 }
  0xe4   : > { %v815_v60 = vadd.f32 %v808_v56, %v743_v55  ;;  %v998_v61 = vpop.f32.mrf.mxu1 }
  0xe5   : > { %v739_v62 = vpop.f32.mrf.mxu0 }
  0xe6   : > { %v824_v63 = vadd.f32 %v960_v57, %v815_v60  ;;  %v744_v0 = vadd.f32 %v739_v62, %v670_v59  ;;  %v811_v1 = vpop.f32.mrf.mxu1 }
  0xe7   : > { %v993_v2 = vpop.f32.mrf.mxu0 }
  0xe8   : > { %v826_v3 = vmax.f32 %v824_v63, 0.0  ;;  %v816_v4 = vadd.f32 %v811_v1, %v744_v0  ;;  %v999_v5 = vpop.f32.mrf.mxu1 }
  0xea   : > { %829 = vst.msk [vmem:[%s530_s15] sm:$0xff] %vm828_vm3, %v826_v3  ;;  %v825_v6 = vadd.f32 %v960_v57, %v816_v4 }
  0xec   : > { %v827_v7 = vmax.f32 %v825_v6, 0.0 }
  0xee   : > { %830 = vst.msk [vmem:[%s530_s15 + $0x8] sm:$0xff] %vm828_vm3, %v827_v7 }
  0xef PF: > { %s24_s29 = sadd.s32 1, %s1016_s29  }
  0xf0   : > { %p21_p4 = scmp.ge.s32.totalorder %s24_s29, 4  }
  0xf2   :  { %23 = sbr.rel (!%p21_p4) target bundleno = 1 (0x1), region = 118 }

// kernel: bottle2neck_forward.11
= control target key start
LH: loop header
LB: loop body
LE: loop exit
PB: predicated region body
PF: predicated region fallthrough
CT: control target
= control target key end

     0   :  { %15 = vsyncpa [#allocation3], 0  ;;  %s1183_s0 = inlined_call_operand.vmem [shape: f32[2,16,32], index: 0, kind: input, shape index: {}]   ;;  %s1184_s1 = inlined_call_operand.vmem [shape: f32[1,32], index: 1, kind: input, shape index: {}]   ;;  %s1185_s2 = inlined_call_operand.vmem [shape: f32[1,32], index: 2, kind: input, shape index: {}]   ;;  %s1186_s3 = inlined_call_operand.vmem [shape: bf16[32,128], index: 3, kind: input, shape index: {}]   ;;  %s1187_s4 = inlined_call_operand.vmem [shape: f32[1,128], index: 4, kind: input, shape index: {}]   ;;  %s1188_s5 = inlined_call_operand.vmem [shape: bf16[128,32], index: 5, kind: input, shape index: {}]   ;;  %s1189_s6 = inlined_call_operand.vmem [shape: f32[1,32], index: 6, kind: input, shape index: {}]   ;;  %s1190_s7 = inlined_call_operand.vmem [shape: f32[2,16,16], index: 7, kind: input, shape index: {}]   ;;  %s1191_s8 = inlined_call_operand.vmem [shape: bf16[16,32], index: 8, kind: input, shape index: {}]   ;;  %s1192_s9 = inlined_call_operand.vmem [shape: f32[1,32], index: 9, kind: input, shape index: {}]   ;;  %s1193_s10 = inlined_call_operand.hbm [shape: f32[2,16,32], index: 10, kind: output, shape index: {}]  }
   0x1   :  { %17 = vsyncpa [#allocation3 + $0x1], 0  ;;  %s1007_s13 = smov 0   ;;  %s1009_s14 = smov 0  }
   0x2   :  { %s1011_s15 = smov 0   ;;  %s1013_s16 = smov 0  }
   0x3 LB: > { %s1028_s17 = sadd.s32 4294967295, %s945_s16   ;;  %s745_s18 = sadd.s32 4294967294, %s945_s16   ;;  %s945_s16 = sphi %s1013_s16, %s1199_s16   ;;  %s941_s15 = sphi %s1011_s15, %s1198_s15   ;;  %s937_s14 = sphi %s1009_s14, %s1197_s14   ;;  %s933_s13 = sphi %s1007_s13, %s1196_s13  }
   0x4   : > { %s1032_s19 = sadd.s32 1, %s945_s16   ;;  %s250_s20 = sadd.s32 1, %s941_s15 }
   0x5   : > { %s247_s21 = ssub.s32 %s945_s16, %s1032_s19  ;;  %p260_p0 = scmp.ne.s32.totalorder %s941_s15, %s937_s14 }
   0x6   : > { %p248_p1 = scmp.eq.s32.totalorder %s247_s21, 0  ;;  %p261_p2 = scmp.eq.s32.totalorder %s1028_s17, 1 }
   0x7   : > { %p266_p3 = scmp.ne.s32.totalorder %s937_s14, %s933_s13  ;;  %p267_p4 = scmp.eq.s32.totalorder %s745_s18, 1 }
   0x8   : > { %s1043_s22 = scalar_select %p248_p1, %s941_s15, %s250_s20  }
   0x9   : > { %p1045_p5 = por %p261_p2, %p260_p0  ;;  %p1049_p6 = por %p267_p4, %p266_p3 }
   0xa   : > { %p748_p7 = scmp.ge.s32.totalorder %s945_s16, 1  ;;  %p325_p8 = scmp.lt.s32.totalorder %s945_s16, 3 }
   0xc   : > { %p326_p9 = pnand %p748_p7, %p325_p8 }
   0xd   : > { %p368_p10 = scmp.lt.s32.totalorder (!%p326_p9), %s1028_s17, 1  ;;  %s365_s18 = sand.u32 (!%p326_p9), 1, %s937_s14  }
   0xe   : > { %329 = sbr.rel (%p326_p9) target bundleno = 493 (0x1ed), region = 60  ;;  %s749_s20 = sshll.u32 (!%p326_p9), %s365_s18, 4 }
   0xf   : > { %s367_s27 = scalar_lea.vmem (!%p326_p9), [#allocation2], %s749_s20  ;;  %s949_s20 = smov (!%p326_p9), [#allocation2]  }
  0x10   : > { %s889_s21 = sshll.u32 (!%p326_p9), %s949_s20, 4  ;;  %s890_s21 = int_to_ptr.vmem [resolvable:$false] %s889_s21 }
  0x11   : > { %s891_s26 = scalar_lea.vmem (!%p326_p9), %s890_s21, 512 }
  0x13   : > { %v870_v0 = vld [vmem:[%s1186_s3 + $0x8] sm:$0xff]   ;;  %v947_v1 = vmov 0.0   ;;  %v871_v2 = vld [vmem:[%s1186_s3] sm:$0xff]   ;;  %vm948_vm0 = vmmov 0   ;;  %v872_v3 = vld [vmem:[%s1188_s5 + $0x38] sm:$0xff]   ;;  %s1068_s11 = scalar_select %p368_p10, %s1028_s17, 1  ;;  %v647_v55 = vlaneseq }
  0x14   : > { %793 = vmatprep.subr.bf16.mxu0 %v947_v1  ;;  %801 = vmatprep.subr.bf16.mxu1 %v947_v1  ;;  %v754_v4 = vld [vmem:[%s1184_s1] ss:$0 sm:$0xff]  ;;  %v873_v5 = vld [vmem:[%s1188_s5 + $0x30] sm:$0xff]   ;;  %vm399_vm1 = vcmask 261120   ;;  %v874_v11 = vld [vmem:[%s1188_s5 + $0x28] sm:$0xff]   ;;  %vm602_vm2 = vcmask 130048  }
  0x15   : > { %794 = vmatpush3.bf16.msra.mxu0 %v870_v0  ;;  %797 = vmatprep.mubr.msk.bf16.mxu0 %vm948_vm0, %v947_v1  ;;  %s776_s25 = sshll.u32 %s1068_s11, 4  ;;  %v755_v6 = vld [vmem:[%s1185_s2] ss:$0 sm:$0xff]  ;;  %v876_v19 = vld [vmem:[%s1188_s5 + $0x18] sm:$0xff]   ;;  %v877_v22 = vld [vmem:[%s1188_s5 + $0x10] sm:$0xff]   ;;  %v648_v56 = vshrl.u32 %v647_v55, 7 }
  0x16   : > { %795 = vmatprep.subr.bf16.mxu0 %v947_v1  ;;  %817 = vmatprep.mubr.msk.bf16.mxu1 %vm948_vm0, %v947_v1  ;;  %s372_s28 = scalar_lea.vmem %s1183_s0, %s776_s25  ;;  %v875_v16 = vld [vmem:[%s1188_s5 + $0x20] sm:$0xff]   ;;  %v878_v28 = vld [vmem:[%s1188_s5 + $0x8] sm:$0xff]   ;;  %s377_s29 = scalar_lea.vmem %s1190_s7, %s776_s25 }
  0x17   : > { %802 = vmatpush3.bf16.msra.mxu1 %v872_v3  ;;  %v379_v7 = vld [vmem:[%s372_s28] sm:$0xff]  ;;  %v380_v8 = vld [vmem:[%s372_s28 + $0x8] sm:$0xff]  ;;  %v649_v57 = vsub.s32 0, %v648_v56  ;;  %s671_s28 = sshll.u32 %s367_s27, 4  ;;  %s1139_s28 = int_to_ptr.vmem [resolvable:$true] %s671_s28 }
  0x18   : > { %803 = vmatprep.subr.bf16.mxu1 %v947_v1  ;;  %v388_v9 = vmul.f32 %v754_v4, %v379_v7  ;;  %v389_v10 = vmul.f32 %v754_v4, %v380_v8  ;;  %v879_v29 = vld [vmem:[%s1188_s5] sm:$0xff]   ;;  %v585_v32 = vld [vmem:[%s377_s29 + $0x8] sm:$0xff]  ;;  %s885_s25 = scalar_lea.vmem %s1139_s28, 256  ;;  %p892_p0 = scmp.lt.s32.totalorder %s1139_s28, %s890_s21 }
  0x19   : > { %796 = vmatpush3.bf16.msra.mxu0 %v871_v2  ;;  %v880_v30 = vld [vmem:[%s1191_s8] sm:$0xff]   ;;  %p886_p11 = scmp.ne.s32.totalorder %s1139_s28, %s885_s25  ;;  %p893_p1 = scmp.lt.s32.totalorder %s891_s26, %s885_s25 }
  0x1a   : > { %821 = vmatprep.subr.bf16.mxu0 %v947_v1  ;;  %v1088_v12 = vadd.f32 %v755_v6, %v388_v9  ;;  %v1090_v13 = vadd.f32 %v755_v6, %v389_v10  ;;  %v584_v31 = vld [vmem:[%s377_s29] sm:$0xff]  ;;  %s778_s29 = sshll.u32 %s1028_s17, 8  ;;  %s1143_s17 = scalar_lea.sflag [#allocation3], %s365_s18 }
  0x1b   : > { %804 = vmatpush3.bf16.msra.mxu1 %v873_v5  ;;  %v586_v33 = vpack.c.bf16 %v585_v32, %v584_v31  ;;  %v415_v34 = vld [vmem:[%s1187_s4] sm:$0x1]  ;;  %s1137_s11 = scalar_lea.hbm %s1193_s10, %s778_s29  ;;  %p887_p12 = pnand %p886_p11, %p1045_p5 }
  0x1c   : > { %805 = vmatprep.subr.bf16.mxu1 %v947_v1  ;;  %v400_v14 = vsel %vm399_vm1, %v1088_v12, 0.0  ;;  %v401_v15 = vsel %vm399_vm1, %v1090_v13, 0.0  ;;  %v489_v46 = vld [vmem:[%s1189_s6] sm:$0x1]  ;;  %p894_p2 = por %p893_p1, %p892_p0 }
  0x1d   : > { %v402_v17 = vadd.f32 %v401_v15, %v400_v14  ;;  %v768_v59 = vld [vmem:[%s1192_s9] ss:$0 sm:$0xff]  ;;  %p888_p13 = pneg %p887_p12 }
  0x1f   : > { %806 = vmatpush3.bf16.msra.mxu1 %v874_v11  ;;  %v403_v18 = vrot.slane %v402_v17, 4  ;;  %p895_p3 = pnand %p894_p2, %p888_p13 }
  0x20   : > { %807 = vmatprep.subr.bf16.mxu1 %v947_v1 }
  0x21   : > { %v404_v20 = vadd.f32 %v403_v18, %v402_v17 }
  0x23   : > { %808 = vmatpush3.bf16.msra.mxu1 %v875_v16  ;;  %v405_v21 = vrot.slane %v404_v20, 2 }
  0x24   : > { %809 = vmatprep.subr.bf16.mxu1 %v947_v1 }
  0x25   : > { %v406_v23 = vadd.f32 %v405_v21, %v404_v20 }
  0x27   : > { %810 = vmatpush3.bf16.msra.mxu1 %v876_v19  ;;  %v407_v24 = vrot.slane %v406_v23, 1 }
  0x28   : > { %811 = vmatprep.subr.bf16.mxu1 %v947_v1 }
  0x29   : > { %v408_v25 = vadd.f32 %v407_v24, %v406_v23 }
  0x2b   : > { %812 = vmatpush3.bf16.msra.mxu1 %v877_v22  ;;  %v409_v26 = vmul.f32 0.0625, %v408_v25 }
  0x2c   : > { %813 = vmatprep.subr.bf16.mxu1 %v947_v1 }
  0x2d   : > { %v410_v27 = vpack.c.bf16 %v409_v26, %v409_v26 }
  0x2f   : > { %798 = vmatmul.mubr.msk.bf16.vlgmr.msra.gmra.mxu0 %vm399_vm1, %v410_v27  ;;  %814 = vmatpush3.bf16.msra.mxu1 %v878_v28 }
  0x30   : > { %823 = vmatprep.mubr.msk.bf16.mxu0 %vm948_vm0, %v947_v1  ;;  %815 = vmatprep.subr.bf16.mxu1 %v947_v1 }
  0x31   : > { %822 = vmatpush3.bf16.msra.mxu0 %v880_v30 }
  0x33   : > { %816 = vmatpush3.bf16.msra.mxu1 %v879_v29 }
  0x37   : > { %824 = vmatmul.mubr.msk.bf16.vlgmr.msra.gmra.mxu0 %vm602_vm2, %v586_v33 }
  0xef   : > { %v465_v35 = vpop.f32.mrf.mxu0 }
  0xf0   : > { %v466_v36 = vadd.f32 %v465_v35, %v415_v34 }
  0xf1   : > { %v799_v37 = vpop.f32.mrf.mxu0 }
  0xf2   : > { %v471_v38 = vmax.f32 %v466_v36, 0.0 }
  0xf3   : > { %v468_v39 = vpop.f32.mrf.mxu0 }
  0xf4   : > { %v472_v40 = vpack.c.bf16 %v471_v38, %v471_v38 }
  0xf5   : > { %v800_v41 = vpop.f32.mrf.mxu0 }
  0xf6   : > { %818 = vmatmul.mubr.bf16.vlgmr.msra.gmra.mxu1 %v472_v40 }
  0xf7   : > { %v640_v42 = vpop.f32.mrf.mxu0 }
  0xf8   : > { %v641_v61 = vadd.f32 %v768_v59, %v640_v42 }
  0xf9   : > { %v825_v43 = vpop.f32.mrf.mxu0 }
  0xfb   : > { %v643_v44 = vpop.f32.mrf.mxu0 }
  0xfc   : > { %v644_v63 = vadd.f32 %v768_v59, %v643_v44 }
  0xfd   : > { %v826_v45 = vpop.f32.mrf.mxu0 }
 0x1b6   : > { %v572_v47 = vpop.f32.mrf.mxu1 }
 0x1b7   : > { %v573_v48 = vadd.f32 %v572_v47, %v489_v46 }
 0x1b8   : > { %v819_v49 = vpop.f32.mrf.mxu1 }
 0x1b9   : > { %v767_v50 = vmul.f32 -1.442695, %v573_v48 }
 0x1ba   : > { %v575_v51 = vpop.f32.mrf.mxu1 }
 0x1bb   : > { %881 = vpow2.f32 %v767_v50 }
 0x1bc   : > { %v820_v52 = vpop.f32.mrf.mxu1 }
 0x1c8   : > { %v882_v53 = vpop.eup %881 }
 0x1c9   : > { %v581_v54 = vadd.f32 1.0, %v882_v53 }
 0x1cb   : > { %883 = vrcp.f32 %v581_v54 }
 0x1d8   : > { %v884_v58 = vpop.eup %883 }
 0x1d9   : > { %v650_v60 = vrot.slane %v884_v58, %v649_v57 }
 0x1db   : > { %v651_v62 = vmul.f32 %v650_v60, %v1088_v12  ;;  %v652_v0 = vmul.f32 %v650_v60, %v1090_v13 }
 0x1dd   : > { %v653_v1 = vadd.f32 %v651_v62, %v641_v61  ;;  %v654_v2 = vadd.f32 %v652_v0, %v644_v63 }
 0x1df   : > { %655 = vst.msk [vmem:[%s367_s27] sm:$0xff] %vm399_vm1, %v653_v1  ;;  %656 = vst.msk [vmem:[%s367_s27 + $0x8] sm:$0xff] %vm399_vm1, %v654_v2 }
 0x1e0   : > { %898 = shalt.err (!%p895_p3)
}
 0x1e1   : > { %s899_s18 = scalar_lea.hbm %s1137_s11, 256  ;;  %s903_s30 = scalar_lea.hbm %s1193_s10, 512 }
 0x1e2   : > { %p900_p4 = scmp.ne.s32.totalorder %s1137_s11, %s899_s18  ;;  %p904_p9 = scmp.lt.s32.totalorder %s1137_s11, %s1193_s10 }
 0x1e3   : > { %p905_p10 = scmp.lt.s32.totalorder %s903_s30, %s899_s18 }
 0x1e4   : > { %p901_p7 = pnand %p900_p4, %p1045_p5 }
 0x1e5   : > { %p906_p11 = por %p905_p10, %p904_p9 }
 0x1e6   : > { %p902_p8 = pneg %p901_p7 }
 0x1e8   : > { %p907_p12 = pnand %p906_p11, %p902_p8 }
 0x1ea   : > { %910 = shalt.err (!%p907_p12)
}
 0x1eb   : > { %s950_s25 = smov 128   ;;  %s951_s21 = smov 8  }
 0x1ec   : > { %827 = dma.vmem_to_hbm [thread:$0]  (%p1045_p5), %s1139_s28, 256, %s1137_s11, %s1143_s17, %s950_s25, %s950_s25, %s951_s21  }
 0x1ed PF: > { %p833_p13 = scmp.ge.s32.totalorder %s945_s16, 2  ;;  %s686_s26 = sand.u32 1, %s933_s13  }
 0x1ee   : > { %s687_s18 = scalar_lea.sflag [#allocation3], %s686_s26 }
 0x1ef   : > { %p830_p0 = pnand %p833_p13, %p1049_p6 }
 0x1f1   : > { %p831_p1 = pneg %p830_p0 }
 0x1f3   : > { %928 = dma.done.wait (%p831_p1), %s687_s18, 256  }
 0x1f4   : > { %930 = vsyncadd (%p831_p1), %s687_s18, 4294967040  ;;  %p20_p2 = scmp.ge.s32.totalorder %s1032_s19, 4   ;;  %s1196_s13 = smov %s937_s14 }
 0x1f5   : > { %s1197_s14 = smov %s941_s15  ;;  %s1198_s15 = smov %s1043_s22 }
 0x1f6   : > { %s1199_s16 = smov %s1032_s19  ;;  %22 = sbr.rel (!%p20_p2) target bundleno = 3 (0x3), region = 98 }
 0x1fb   :  { %692 = vsyncpa [#allocation3], 1 }
 0x1fc   :  { %694 = vsyncpa [#allocation3 + $0x1], 1 }

</bundles_post_ra>
